<compile_context>
chip_gen: v7x
topology: tpu7x:2x2x1
jax: 0.10.0
libtpu: 0.0.40
codegen_flags: <defaults>
</compile_context>

<pallas_src>
import jax
import jax.numpy as jnp
from jax.experimental import pallas as pl
from jax.experimental.pallas import tpu as pltpu

HIDDEN = 500
BN_EPS = 1e-5
LANE = 128


def _round_up(v, m):
    return ((v + m - 1) // m) * m


# ----------------------------------------------------------------------------
# Kernels
# ----------------------------------------------------------------------------
def _accumulate_stats(z, stats_ref):
    """Accumulate per-feature [sum; sum of squares] into the resident [2, HP]
    output block (single traversal of z; init at the first grid step)."""
    ssum = jnp.sum(z, axis=0, keepdims=True)
    ssq = jnp.sum(z * z, axis=0, keepdims=True)

    @pl.when(pl.program_id(0) == 0)
    def _():
        stats_ref[...] = jnp.zeros_like(stats_ref)

    stats_ref[...] += jnp.concatenate([ssum, ssq], axis=0)


def _first_layer_kernel(x_ref, w_ref, z_ref, stats_ref):
    # x is already bf16; MXU matmul with f32 accumulation.
    z = jnp.dot(x_ref[...], w_ref[...], preferred_element_type=jnp.float32)
    z_ref[...] = z
    _accumulate_stats(z, stats_ref)


def _normalize_relu(z_prev, stats_prev, gb, n_true):
    """BatchNorm (train-mode, biased variance) folded to per-feature
    scale/shift, then ReLU.  Epilogue per element: mul, add, max."""
    inv_n = jnp.float32(1.0 / n_true)
    mean = stats_prev[0:1, :] * inv_n
    ex2 = stats_prev[1:2, :] * inv_n
    var = jnp.maximum(ex2 - mean * mean, 0.0)
    gamma = gb[0:1, :]
    beta = gb[1:2, :]
    scale = gamma * jax.lax.rsqrt(var + BN_EPS)
    shift = beta - mean * scale
    return jnp.maximum(z_prev * scale + shift, 0.0)


def _make_mid_kernel(n_true, tm, mask_needed):
    def kernel(zp_ref, sp_ref, gb_ref, w_ref, z_ref, stats_ref):
        h = _normalize_relu(zp_ref[...], sp_ref[...], gb_ref[...], n_true)
        if mask_needed:
            # Zero out padded batch rows so they contribute exact zeros to the
            # next layer's matmul and statistics (only emitted when N % TM != 0).
            row0 = pl.program_id(0) * tm
            rows = row0 + jax.lax.broadcasted_iota(jnp.int32, (tm, 1), 0)
            h = jnp.where(rows < n_true, h, 0.0)
        z = jnp.dot(h.astype(jnp.bfloat16), w_ref[...],
                    preferred_element_type=jnp.float32)
        z_ref[...] = z
        _accumulate_stats(z, stats_ref)

    return kernel


def _make_last_kernel(n_true):
    def kernel(zp_ref, sp_ref, gb_ref, w_ref, b_ref, o_ref):
        h = _normalize_relu(zp_ref[...], sp_ref[...], gb_ref[...], n_true)
        out = jnp.dot(h.astype(jnp.bfloat16), w_ref[...],
                      preferred_element_type=jnp.float32) + b_ref[...]
        o_ref[...] = out.astype(o_ref.dtype)

    return kernel


# ----------------------------------------------------------------------------
# Wrapper
# ----------------------------------------------------------------------------
def prepare_params(params):
    """One-time parameter preprocessing (do NOT call per forward step).

    params: flat tuple in PyTorch order with Linear weights already transposed
    to [fan_in, fan_out] and biases / BN gamma / beta as [1, F].
    Returns padded, bf16-cast, packed arrays ready for the kernels.
    """
    (w1, b1, g1, be1, w2, b2, g2, be2,
     w3, b3, g3, be3, w4, b4, g4, be4, w5, b5) = params
    del b1, b2, b3, b4  # exactly cancelled by the BN mean subtraction

    d_in = w1.shape[0]
    d_out = w5.shape[1]
    hp = _round_up(HIDDEN, LANE)          # 500 -> 512
    d_in_p = _round_up(d_in, LANE)        # lane/K-aligned first matmul
    d_out_p = _round_up(d_out, LANE)      # lane-dense output stores

    def pad2(a, rows, cols):
        return jnp.pad(a, ((0, rows - a.shape[0]), (0, cols - a.shape[1])))

    return {
        "d_in": d_in, "d_out": d_out,
        "d_in_p": d_in_p, "hp": hp, "d_out_p": d_out_p,
        "w1": pad2(w1, d_in_p, hp).astype(jnp.bfloat16),
        "w2": pad2(w2, hp, hp).astype(jnp.bfloat16),
        "w3": pad2(w3, hp, hp).astype(jnp.bfloat16),
        "w4": pad2(w4, hp, hp).astype(jnp.bfloat16),
        "w5": pad2(w5, hp, d_out_p).astype(jnp.bfloat16),
        # Per-layer [2, hp] slabs: row 0 = gamma, row 1 = beta.
        "gb": tuple(
            jnp.concatenate([pad2(g, 1, hp), pad2(be, 1, hp)], axis=0)
            for g, be in ((g1, be1), (g2, be2), (g3, be3), (g4, be4))),
        "b5": pad2(b5, 1, d_out_p).astype(jnp.float32),
    }


def _vmem_capacity_bytes():
    try:
        info = pltpu.get_tpu_info()
        cap = getattr(info, "vmem_capacity_bytes", None)
        if cap:
            return int(cap)
    except Exception:
        pass
    return 64 << 20  # conservative fallback (v7x per-TC physical VMEM)


def _vmem_limit_bytes(tm, d_in_p, hp, d_out_p):
    wide_in = max(d_in_p, hp)
    wide_out = max(hp, d_out_p)
    per_call = (
        2 * tm * wide_in * 4            # double-buffered tiled activation input
        + 2 * tm * wide_out * 4         # double-buffered tiled output
        + 2 * wide_in * wide_out * 2    # resident bf16 weight (2 bufs)
        + 6 * tm * hp * 4               # live f32 / bf16 temporaries
        + (1 << 20))                    # headroom
    cap = _vmem_capacity_bytes()
    return int(min(max(per_call, 32 << 20), cap * 3 // 4))


def laplace_neural_operator_forward(x, prep, *, tile_m=256):
    """x: [N, input_size*num_red] float32; prep: output of prepare_params()."""
    n, d_in = x.shape
    d_in_p, hp, d_out_p = prep["d_in_p"], prep["hp"], prep["d_out_p"]
    d_out = prep["d_out"]
    assert d_in == prep["d_in"]

    # Batch tiling: TM ~256 feeds full MXU tiles on v6e/v7x (128-multiple is
    # enough on v5e, which tends to prefer even larger TM); tiny batches use a
    # single 8-row-aligned tile.
    tm = min(tile_m, _round_up(n, 8))
    n_pad = _round_up(n, tm)
    n_tiles = n_pad // tm
    mask_needed = n_pad != n

    # x is only ever the bf16 LHS of the first matmul: pre-cast + zero-pad.
    xb = jnp.pad(x.astype(jnp.bfloat16), ((0, n_pad - n), (0, d_in_p - d_in)))

    vmem_limit = _vmem_limit_bytes(tm, d_in_p, hp, d_out_p)
    cp_acc = pltpu.CompilerParams(dimension_semantics=("arbitrary",),
                                  vmem_limit_bytes=vmem_limit)
    cp_par = pltpu.CompilerParams(dimension_semantics=("parallel",),
                                  vmem_limit_bytes=vmem_limit)

    def tiled(shape):
        return pl.BlockSpec(shape, lambda i: (i, 0))

    def resident(shape):
        return pl.BlockSpec(shape, lambda i: (0, 0))

    z_shape = jax.ShapeDtypeStruct((n_pad, hp), jnp.float32)
    stats_shape = jax.ShapeDtypeStruct((2, hp), jnp.float32)

    # Layer 1: matmul + stats.
    z, stats = pl.pallas_call(
        _first_layer_kernel,
        out_shape=(z_shape, stats_shape),
        grid_spec=pltpu.PrefetchScalarGridSpec(
            num_scalar_prefetch=0,
            grid=(n_tiles,),
            in_specs=[tiled((tm, d_in_p)), resident((d_in_p, hp))],
            out_specs=(tiled((tm, hp)), resident((2, hp)))),
        compiler_params=cp_acc,
    )(xb, prep["w1"])

    # Layers 2-4: normalize previous z + ReLU + matmul + stats.
    mid_kernel = _make_mid_kernel(n, tm, mask_needed)
    for li in range(1, 4):
        z, stats = pl.pallas_call(
            mid_kernel,
            out_shape=(z_shape, stats_shape),
            grid_spec=pltpu.PrefetchScalarGridSpec(
                num_scalar_prefetch=0,
                grid=(n_tiles,),
                in_specs=[tiled((tm, hp)), resident((2, hp)),
                          resident((2, hp)), resident((hp, hp))],
                out_specs=(tiled((tm, hp)), resident((2, hp)))),
            compiler_params=cp_acc,
        )(z, stats, prep["gb"][li - 1], prep["w" + str(li + 1)])

    # Layer 5: normalize + ReLU + final matmul + bias (no stats accumulator,
    # so the batch-tile axis can be "parallel").
    out_p = pl.pallas_call(
        _make_last_kernel(n),
        out_shape=jax.ShapeDtypeStruct((n_pad, d_out_p), jnp.float32),
        grid_spec=pltpu.PrefetchScalarGridSpec(
            num_scalar_prefetch=0,
            grid=(n_tiles,),
            in_specs=[tiled((tm, hp)), resident((2, hp)), resident((2, hp)),
                      resident((hp, d_out_p)), resident((1, d_out_p))],
            out_specs=tiled((tm, d_out_p))),
        compiler_params=cp_par,
    )(z, stats, prep["gb"][3], prep["w5"], prep["b5"])

    return out_p[:n, :d_out]


# ----------------------------------------------------------------------------
# Init + pure-JAX reference
# ----------------------------------------------------------------------------
def init_params(key, d_in, d_out):
    """Deterministic init mirroring nn.Linear (U(+-1/sqrt(fan_in))) and
    BatchNorm1d (gamma=1, beta=0).  Linear weights stored as [fan_in, fan_out]."""
    dims = [(d_in, HIDDEN), (HIDDEN, HIDDEN), (HIDDEN, HIDDEN),
            (HIDDEN, HIDDEN), (HIDDEN, d_out)]
    params = []
    for li, (fi, fo) in enumerate(dims):
        key, kw, kb = jax.random.split(key, 3)
        bound = 1.0 / jnp.sqrt(jnp.float32(fi))
        w = jax.random.uniform(kw, (fi, fo), jnp.float32, -bound, bound)
        b = jax.random.uniform(kb, (1, fo), jnp.float32, -bound, bound)
        params += [w, b]
        if li < 4:  # BatchNorm after the first four Linears
            params += [jnp.ones((1, fo), jnp.float32),
                       jnp.zeros((1, fo), jnp.float32)]
    return tuple(params)


def reference_forward(x, params):
    """Pure-JAX mirror of the kernel math (bf16 MXU operands, f32 accumulation,
    train-mode batch-stat BN folded to scale/shift, b1..b4 cancelled by the
    BN mean subtraction)."""
    (w1, b1, g1, be1, w2, b2, g2, be2,
     w3, b3, g3, be3, w4, b4, g4, be4, w5, b5) = params

    def lbr(h, w, g, be):
        z = jnp.dot(h.astype(jnp.bfloat16), w.astype(jnp.bfloat16),
                    preferred_element_type=jnp.float32)
        m = jnp.mean(z, axis=0, keepdims=True)
        v = jnp.maximum(jnp.mean(z * z, axis=0, keepdims=True) - m * m, 0.0)
        scale = g * jax.lax.rsqrt(v + BN_EPS)
        shift = be - m * scale
        return jnp.maximum(z * scale + shift, 0.0)

    h = lbr(x, w1, g1, be1)
    h = lbr(h, w2, g2, be2)
    h = lbr(h, w3, g3, be3)
    h = lbr(h, w4, g4, be4)
    return jnp.dot(h.astype(jnp.bfloat16), w5.astype(jnp.bfloat16),
                   preferred_element_type=jnp.float32) + b5


if __name__ == "__main__":
    # Small, deterministic setup:
    #   eigenvectors: [num_points=16, num_red=8]  (only shapes matter here)
    #   input_size=4, output_size=3  ->  D_in=32, D_out=24
    #   batch N = 8
    key = jax.random.PRNGKey(0)
    num_points, num_red = 16, 8
    input_size, output_size = 4, 3
    d_in = input_size * num_red
    d_out = output_size * num_red
    n = 8

    key, kx, kp = jax.random.split(key, 3)
    x = jax.random.normal(kx, (n, d_in), jnp.float32)
    params = init_params(kp, d_in, d_out)

    # One-time parameter preprocessing (padding / bf16 cast / packing).
    prep = prepare_params(params)

    fwd = jax.jit(lambda xx: laplace_neural_operator_forward(xx, prep))
    out = jax.block_until_ready(fwd(x))

    ref = reference_forward(x, params)
    assert out.shape == (n, d_out)
    assert jnp.allclose(out, ref, atol=2e-3, rtol=2e-3)

    print("KERNEL_OK")
</pallas_src>

<mosaic_0001>
module attributes {stable_mosaic.version = 11 : i64} {
  func.func @_first_layer_kernel(%arg0: i32, %arg1: memref<8x128xbf16, #tpu.memory_space<vmem>>, %arg2: memref<128x512xbf16, #tpu.memory_space<vmem>>, %arg3: memref<8x512xf32, #tpu.memory_space<vmem>>, %arg4: memref<2x512xf32, #tpu.memory_space<vmem>>) attributes {dimension_semantics = [#tpu.dimension_semantics<arbitrary>], iteration_bounds = array<i64: 1>, scalar_prefetch = 0 : i64, scratch_operands = 0 : i64, tpu.core_type = #tpu.core_type<tc>, window_params = [{transform_indices = @transform_0, window_bounds = array<i64: 8, 128>}, {pipeline_mode = #tpu.pipeline_mode<synchronous>, transform_indices = @transform_1, window_bounds = array<i64: 128, 512>}, {transform_indices = @transform_2, window_bounds = array<i64: 8, 512>}, {pipeline_mode = #tpu.pipeline_mode<synchronous>, transform_indices = @transform_3, window_bounds = array<i64: 2, 512>}]} {
    %c0 = arith.constant 0 : index
    %c0_0 = arith.constant 0 : index
    %0 = vector.load %arg1[%c0, %c0_0] : memref<8x128xbf16, #tpu.memory_space<vmem>>, vector<8x128xbf16>
    %c0_1 = arith.constant 0 : index
    %c0_2 = arith.constant 0 : index
    %1 = vector.load %arg2[%c0_1, %c0_2] : memref<128x512xbf16, #tpu.memory_space<vmem>>, vector<128x512xbf16>
    %cst = arith.constant dense<0.000000e+00> : vector<8x512xf32>
    %2 = tpu.matmul %0, %1, %cst {dimension_numbers = #tpu.dot_dimension_numbers<[1], [0], [0], [1], [0, 0, 1, 1], [], []>} : vector<8x128xbf16>, vector<128x512xbf16>, vector<8x512xf32> -> vector<8x512xf32>
    %c0_3 = arith.constant 0 : index
    %c0_4 = arith.constant 0 : index
    %3 = vector.load %arg3[%c0_3, %c0_4] : memref<8x512xf32, #tpu.memory_space<vmem>>, vector<8x512xf32>
    tpu.vector_store %arg3[%c0_3, %c0_4], %2 {strides = array<i32>} : memref<8x512xf32, #tpu.memory_space<vmem>>, vector<8x512xf32>,
    %cst_5 = arith.constant dense<0.000000e+00> : vector<512xf32>
    %4 = vector.multi_reduction <add>, %2, %cst_5 [0] : vector<8x512xf32> to vector<512xf32>
    %5 = vector.shape_cast %4 : vector<512xf32> to vector<1x512xf32>
    %6 = arith.mulf %2, %2 : vector<8x512xf32>
    %cst_6 = arith.constant dense<0.000000e+00> : vector<512xf32>
    %7 = vector.multi_reduction <add>, %6, %cst_6 [0] : vector<8x512xf32> to vector<512xf32>
    %8 = vector.shape_cast %7 : vector<512xf32> to vector<1x512xf32>
    %c0_i32 = arith.constant 0 : i32
    %9 = arith.cmpi eq, %arg0, %c0_i32 : i32
    %10 = arith.extui %9 : i1 to i32
    %c0_i32_7 = arith.constant 0 : i32
    %11 = arith.cmpi ne, %10, %c0_i32_7 : i32
    scf.if %11 {
      %cst_12 = arith.constant 0.000000e+00 : f32
      %16 = vector.broadcast %cst_12 : f32 to vector<2x512xf32>
      %c0_13 = arith.constant 0 : index
      %c0_14 = arith.constant 0 : index
      %17 = vector.load %arg4[%c0_13, %c0_14] : memref<2x512xf32, #tpu.memory_space<vmem>>, vector<2x512xf32>
      tpu.vector_store %arg4[%c0_13, %c0_14], %16 {strides = array<i32>} : memref<2x512xf32, #tpu.memory_space<vmem>>, vector<2x512xf32>,
    } else {
    }
    %c0_8 = arith.constant 0 : index
    %c0_9 = arith.constant 0 : index
    %12 = vector.load %arg4[%c0_8, %c0_9] : memref<2x512xf32, #tpu.memory_space<vmem>>, vector<2x512xf32>
    %13 = tpu.concatenate %5, %8 in 0 : vector<1x512xf32>, vector<1x512xf32> -> vector<2x512xf32>
    %14 = arith.addf %12, %13 : vector<2x512xf32>
    %c0_10 = arith.constant 0 : index
    %c0_11 = arith.constant 0 : index
    %15 = vector.load %arg4[%c0_10, %c0_11] : memref<2x512xf32, #tpu.memory_space<vmem>>, vector<2x512xf32>
    tpu.vector_store %arg4[%c0_10, %c0_11], %14 {strides = array<i32>} : memref<2x512xf32, #tpu.memory_space<vmem>>, vector<2x512xf32>,
    return
  }
  func.func @transform_0(%arg0: i32) -> (i32, i32) {
    %c0_i32 = arith.constant 0 : i32
    %c0_i32_0 = arith.constant 0 : i32
    return %arg0, %c0_i32 : i32, i32
  }
  func.func @transform_1(%arg0: i32) -> (i32, i32) {
    %c0_i32 = arith.constant 0 : i32
    %c0_i32_0 = arith.constant 0 : i32
    %c0_i32_1 = arith.constant 0 : i32
    return %c0_i32, %c0_i32_0 : i32, i32
  }
  func.func @transform_2(%arg0: i32) -> (i32, i32) {
    %c0_i32 = arith.constant 0 : i32
    %c0_i32_0 = arith.constant 0 : i32
    return %arg0, %c0_i32 : i32, i32
  }
  func.func @transform_3(%arg0: i32) -> (i32, i32) {
    %c0_i32 = arith.constant 0 : i32
    %c0_i32_0 = arith.constant 0 : i32
    %c0_i32_1 = arith.constant 0 : i32
    return %c0_i32, %c0_i32_0 : i32, i32
  }
}

module attributes {stable_mosaic.version = 11 : i64} {
  func.func @kernel(%arg0: i32, %arg1: memref<8x512xf32, #tpu.memory_space<vmem>>, %arg2: memref<2x512xf32, #tpu.memory_space<vmem>>, %arg3: memref<2x512xf32, #tpu.memory_space<vmem>>, %arg4: memref<512x128xbf16, #tpu.memory_space<vmem>>, %arg5: memref<1x128xf32, #tpu.memory_space<vmem>>, %arg6: memref<8x128xf32, #tpu.memory_space<vmem>>) attributes {dimension_semantics = [#tpu.dimension_semantics<parallel>], iteration_bounds = array<i64: 1>, scalar_prefetch = 0 : i64, scratch_operands = 0 : i64, tpu.core_type = #tpu.core_type<tc>, window_params = [{transform_indices = @transform_0, window_bounds = array<i64: 8, 512>}, {pipeline_mode = #tpu.pipeline_mode<synchronous>, transform_indices = @transform_1, window_bounds = array<i64: 2, 512>}, {pipeline_mode = #tpu.pipeline_mode<synchronous>, transform_indices = @transform_2, window_bounds = array<i64: 2, 512>}, {pipeline_mode = #tpu.pipeline_mode<synchronous>, transform_indices = @transform_3, window_bounds = array<i64: 512, 128>}, {pipeline_mode = #tpu.pipeline_mode<synchronous>, transform_indices = @transform_4, window_bounds = array<i64: 1, 128>}, {transform_indices = @transform_5, window_bounds = array<i64: 8, 128>}]} {
    %c0 = arith.constant 0 : index
    %c0_0 = arith.constant 0 : index
    %0 = vector.load %arg1[%c0, %c0_0] : memref<8x512xf32, #tpu.memory_space<vmem>>, vector<8x512xf32>
    %c0_1 = arith.constant 0 : index
    %c0_2 = arith.constant 0 : index
    %1 = vector.load %arg2[%c0_1, %c0_2] : memref<2x512xf32, #tpu.memory_space<vmem>>, vector<2x512xf32>
    %c0_3 = arith.constant 0 : index
    %c0_4 = arith.constant 0 : index
    %2 = vector.load %arg3[%c0_3, %c0_4] : memref<2x512xf32, #tpu.memory_space<vmem>>, vector<2x512xf32>
    %3 = vector.extract_strided_slice %1 {offsets = [0, 0], sizes = [1, 512], strides = [1, 1]} : vector<2x512xf32> to vector<1x512xf32>
    %cst = arith.constant 1.250000e-01 : f32
    %4 = vector.broadcast %cst : f32 to vector<1x512xf32>
    %5 = arith.mulf %3, %4 : vector<1x512xf32>
    %6 = vector.extract_strided_slice %1 {offsets = [1, 0], sizes = [1, 512], strides = [1, 1]} : vector<2x512xf32> to vector<1x512xf32>
    %cst_5 = arith.constant 1.250000e-01 : f32
    %7 = vector.broadcast %cst_5 : f32 to vector<1x512xf32>
    %8 = arith.mulf %6, %7 : vector<1x512xf32>
    %9 = arith.mulf %5, %5 : vector<1x512xf32>
    %10 = arith.subf %8, %9 : vector<1x512xf32>
    %cst_6 = arith.constant 0.000000e+00 : f32
    %11 = vector.broadcast %cst_6 : f32 to vector<1x512xf32>
    %12 = arith.maximumf %10, %11 : vector<1x512xf32>
    %13 = vector.extract_strided_slice %2 {offsets = [0, 0], sizes = [1, 512], strides = [1, 1]} : vector<2x512xf32> to vector<1x512xf32>
    %14 = vector.extract_strided_slice %2 {offsets = [1, 0], sizes = [1, 512], strides = [1, 1]} : vector<2x512xf32> to vector<1x512xf32>
    %cst_7 = arith.constant 9.99999974E-6 : f32
    %15 = vector.broadcast %cst_7 : f32 to vector<1x512xf32>
    %16 = arith.addf %12, %15 : vector<1x512xf32>
    %17 = math.rsqrt %16 : vector<1x512xf32>
    %18 = arith.mulf %13, %17 : vector<1x512xf32>
    %19 = arith.mulf %5, %18 : vector<1x512xf32>
    %20 = arith.subf %14, %19 : vector<1x512xf32>
    %21 = vector.broadcast %18 : vector<1x512xf32> to vector<8x512xf32>
    %22 = arith.mulf %0, %21 : vector<8x512xf32>
    %23 = vector.broadcast %20 : vector<1x512xf32> to vector<8x512xf32>
    %24 = arith.addf %22, %23 : vector<8x512xf32>
    %cst_8 = arith.constant 0.000000e+00 : f32
    %25 = vector.broadcast %cst_8 : f32 to vector<8x512xf32>
    %26 = arith.maximumf %24, %25 : vector<8x512xf32>
    %27 = arith.truncf %26 : vector<8x512xf32> to vector<8x512xbf16>
    %c0_9 = arith.constant 0 : index
    %c0_10 = arith.constant 0 : index
    %28 = vector.load %arg4[%c0_9, %c0_10] : memref<512x128xbf16, #tpu.memory_space<vmem>>, vector<512x128xbf16>
    %cst_11 = arith.constant dense<0.000000e+00> : vector<8x128xf32>
    %29 = tpu.matmul %27, %28, %cst_11 {dimension_numbers = #tpu.dot_dimension_numbers<[1], [0], [0], [1], [0, 0, 1, 1], [], []>} : vector<8x512xbf16>, vector<512x128xbf16>, vector<8x128xf32> -> vector<8x128xf32>
    %c0_12 = arith.constant 0 : index
    %c0_13 = arith.constant 0 : index
    %30 = vector.load %arg5[%c0_12, %c0_13] : memref<1x128xf32, #tpu.memory_space<vmem>>, vector<1x128xf32>
    %31 = vector.broadcast %30 : vector<1x128xf32> to vector<8x128xf32>
    %32 = arith.addf %29, %31 : vector<8x128xf32>
    %c0_14 = arith.constant 0 : index
    %c0_15 = arith.constant 0 : index
    %33 = vector.load %arg6[%c0_14, %c0_15] : memref<8x128xf32, #tpu.memory_space<vmem>>, vector<8x128xf32>
    tpu.vector_store %arg6[%c0_14, %c0_15], %32 {strides = array<i32>} : memref<8x128xf32, #tpu.memory_space<vmem>>, vector<8x128xf32>,
    return
  }
  func.func @transform_0(%arg0: i32) -> (i32, i32) {
    %c0_i32 = arith.constant 0 : i32
    %c0_i32_0 = arith.constant 0 : i32
    return %arg0, %c0_i32 : i32, i32
  }
  func.func @transform_1(%arg0: i32) -> (i32, i32) {
    %c0_i32 = arith.constant 0 : i32
    %c0_i32_0 = arith.constant 0 : i32
    %c0_i32_1 = arith.constant 0 : i32
    return %c0_i32, %c0_i32_0 : i32, i32
  }
  func.func @transform_2(%arg0: i32) -> (i32, i32) {
    %c0_i32 = arith.constant 0 : i32
    %c0_i32_0 = arith.constant 0 : i32
    %c0_i32_1 = arith.constant 0 : i32
    return %c0_i32, %c0_i32_0 : i32, i32
  }
  func.func @transform_3(%arg0: i32) -> (i32, i32) {
    %c0_i32 = arith.constant 0 : i32
    %c0_i32_0 = arith.constant 0 : i32
    %c0_i32_1 = arith.constant 0 : i32
    return %c0_i32, %c0_i32_0 : i32, i32
  }
  func.func @transform_4(%arg0: i32) -> (i32, i32) {
    %c0_i32 = arith.constant 0 : i32
    %c0_i32_0 = arith.constant 0 : i32
    %c0_i32_1 = arith.constant 0 : i32
    return %c0_i32, %c0_i32_0 : i32, i32
  }
  func.func @transform_5(%arg0: i32) -> (i32, i32) {
    %c0_i32 = arith.constant 0 : i32
    %c0_i32_0 = arith.constant 0 : i32
    return %arg0, %c0_i32 : i32, i32
  }
}

module attributes {stable_mosaic.version = 11 : i64} {
  func.func @kernel(%arg0: i32, %arg1: memref<8x512xf32, #tpu.memory_space<vmem>>, %arg2: memref<2x512xf32, #tpu.memory_space<vmem>>, %arg3: memref<2x512xf32, #tpu.memory_space<vmem>>, %arg4: memref<512x512xbf16, #tpu.memory_space<vmem>>, %arg5: memref<8x512xf32, #tpu.memory_space<vmem>>, %arg6: memref<2x512xf32, #tpu.memory_space<vmem>>) attributes {dimension_semantics = [#tpu.dimension_semantics<arbitrary>], iteration_bounds = array<i64: 1>, scalar_prefetch = 0 : i64, scratch_operands = 0 : i64, tpu.core_type = #tpu.core_type<tc>, window_params = [{transform_indices = @transform_0, window_bounds = array<i64: 8, 512>}, {pipeline_mode = #tpu.pipeline_mode<synchronous>, transform_indices = @transform_1, window_bounds = array<i64: 2, 512>}, {pipeline_mode = #tpu.pipeline_mode<synchronous>, transform_indices = @transform_2, window_bounds = array<i64: 2, 512>}, {pipeline_mode = #tpu.pipeline_mode<synchronous>, transform_indices = @transform_3, window_bounds = array<i64: 512, 512>}, {transform_indices = @transform_4, window_bounds = array<i64: 8, 512>}, {pipeline_mode = #tpu.pipeline_mode<synchronous>, transform_indices = @transform_5, window_bounds = array<i64: 2, 512>}]} {
    %c0 = arith.constant 0 : index
    %c0_0 = arith.constant 0 : index
    %0 = vector.load %arg1[%c0, %c0_0] : memref<8x512xf32, #tpu.memory_space<vmem>>, vector<8x512xf32>
    %c0_1 = arith.constant 0 : index
    %c0_2 = arith.constant 0 : index
    %1 = vector.load %arg2[%c0_1, %c0_2] : memref<2x512xf32, #tpu.memory_space<vmem>>, vector<2x512xf32>
    %c0_3 = arith.constant 0 : index
    %c0_4 = arith.constant 0 : index
    %2 = vector.load %arg3[%c0_3, %c0_4] : memref<2x512xf32, #tpu.memory_space<vmem>>, vector<2x512xf32>
    %3 = vector.extract_strided_slice %1 {offsets = [0, 0], sizes = [1, 512], strides = [1, 1]} : vector<2x512xf32> to vector<1x512xf32>
    %cst = arith.constant 1.250000e-01 : f32
    %4 = vector.broadcast %cst : f32 to vector<1x512xf32>
    %5 = arith.mulf %3, %4 : vector<1x512xf32>
    %6 = vector.extract_strided_slice %1 {offsets = [1, 0], sizes = [1, 512], strides = [1, 1]} : vector<2x512xf32> to vector<1x512xf32>
    %cst_5 = arith.constant 1.250000e-01 : f32
    %7 = vector.broadcast %cst_5 : f32 to vector<1x512xf32>
    %8 = arith.mulf %6, %7 : vector<1x512xf32>
    %9 = arith.mulf %5, %5 : vector<1x512xf32>
    %10 = arith.subf %8, %9 : vector<1x512xf32>
    %cst_6 = arith.constant 0.000000e+00 : f32
    %11 = vector.broadcast %cst_6 : f32 to vector<1x512xf32>
    %12 = arith.maximumf %10, %11 : vector<1x512xf32>
    %13 = vector.extract_strided_slice %2 {offsets = [0, 0], sizes = [1, 512], strides = [1, 1]} : vector<2x512xf32> to vector<1x512xf32>
    %14 = vector.extract_strided_slice %2 {offsets = [1, 0], sizes = [1, 512], strides = [1, 1]} : vector<2x512xf32> to vector<1x512xf32>
    %cst_7 = arith.constant 9.99999974E-6 : f32
    %15 = vector.broadcast %cst_7 : f32 to vector<1x512xf32>
    %16 = arith.addf %12, %15 : vector<1x512xf32>
    %17 = math.rsqrt %16 : vector<1x512xf32>
    %18 = arith.mulf %13, %17 : vector<1x512xf32>
    %19 = arith.mulf %5, %18 : vector<1x512xf32>
    %20 = arith.subf %14, %19 : vector<1x512xf32>
    %21 = vector.broadcast %18 : vector<1x512xf32> to vector<8x512xf32>
    %22 = arith.mulf %0, %21 : vector<8x512xf32>
    %23 = vector.broadcast %20 : vector<1x512xf32> to vector<8x512xf32>
    %24 = arith.addf %22, %23 : vector<8x512xf32>
    %cst_8 = arith.constant 0.000000e+00 : f32
    %25 = vector.broadcast %cst_8 : f32 to vector<8x512xf32>
    %26 = arith.maximumf %24, %25 : vector<8x512xf32>
    %27 = arith.truncf %26 : vector<8x512xf32> to vector<8x512xbf16>
    %c0_9 = arith.constant 0 : index
    %c0_10 = arith.constant 0 : index
    %28 = vector.load %arg4[%c0_9, %c0_10] : memref<512x512xbf16, #tpu.memory_space<vmem>>, vector<512x512xbf16>
    %cst_11 = arith.constant dense<0.000000e+00> : vector<8x512xf32>
    %29 = tpu.matmul %27, %28, %cst_11 {dimension_numbers = #tpu.dot_dimension_numbers<[1], [0], [0], [1], [0, 0, 1, 1], [], []>} : vector<8x512xbf16>, vector<512x512xbf16>, vector<8x512xf32> -> vector<8x512xf32>
    %c0_12 = arith.constant 0 : index
    %c0_13 = arith.constant 0 : index
    %30 = vector.load %arg5[%c0_12, %c0_13] : memref<8x512xf32, #tpu.memory_space<vmem>>, vector<8x512xf32>
    tpu.vector_store %arg5[%c0_12, %c0_13], %29 {strides = array<i32>} : memref<8x512xf32, #tpu.memory_space<vmem>>, vector<8x512xf32>,
    %cst_14 = arith.constant dense<0.000000e+00> : vector<512xf32>
    %31 = vector.multi_reduction <add>, %29, %cst_14 [0] : vector<8x512xf32> to vector<512xf32>
    %32 = vector.shape_cast %31 : vector<512xf32> to vector<1x512xf32>
    %33 = arith.mulf %29, %29 : vector<8x512xf32>
    %cst_15 = arith.constant dense<0.000000e+00> : vector<512xf32>
    %34 = vector.multi_reduction <add>, %33, %cst_15 [0] : vector<8x512xf32> to vector<512xf32>
    %35 = vector.shape_cast %34 : vector<512xf32> to vector<1x512xf32>
    %c0_i32 = arith.constant 0 : i32
    %36 = arith.cmpi eq, %arg0, %c0_i32 : i32
    %37 = arith.extui %36 : i1 to i32
    %c0_i32_16 = arith.constant 0 : i32
    %38 = arith.cmpi ne, %37, %c0_i32_16 : i32
    scf.if %38 {
      %cst_21 = arith.constant 0.000000e+00 : f32
      %43 = vector.broadcast %cst_21 : f32 to vector<2x512xf32>
      %c0_22 = arith.constant 0 : index
      %c0_23 = arith.constant 0 : index
      %44 = vector.load %arg6[%c0_22, %c0_23] : memref<2x512xf32, #tpu.memory_space<vmem>>, vector<2x512xf32>
      tpu.vector_store %arg6[%c0_22, %c0_23], %43 {strides = array<i32>} : memref<2x512xf32, #tpu.memory_space<vmem>>, vector<2x512xf32>,
    } else {
    }
    %c0_17 = arith.constant 0 : index
    %c0_18 = arith.constant 0 : index
    %39 = vector.load %arg6[%c0_17, %c0_18] : memref<2x512xf32, #tpu.memory_space<vmem>>, vector<2x512xf32>
    %40 = tpu.concatenate %32, %35 in 0 : vector<1x512xf32>, vector<1x512xf32> -> vector<2x512xf32>
    %41 = arith.addf %39, %40 : vector<2x512xf32>
    %c0_19 = arith.constant 0 : index
    %c0_20 = arith.constant 0 : index
    %42 = vector.load %arg6[%c0_19, %c0_20] : memref<2x512xf32, #tpu.memory_space<vmem>>, vector<2x512xf32>
    tpu.vector_store %arg6[%c0_19, %c0_20], %41 {strides = array<i32>} : memref<2x512xf32, #tpu.memory_space<vmem>>, vector<2x512xf32>,
    return
  }
  func.func @transform_0(%arg0: i32) -> (i32, i32) {
    %c0_i32 = arith.constant 0 : i32
    %c0_i32_0 = arith.constant 0 : i32
    return %arg0, %c0_i32 : i32, i32
  }
  func.func @transform_1(%arg0: i32) -> (i32, i32) {
    %c0_i32 = arith.constant 0 : i32
    %c0_i32_0 = arith.constant 0 : i32
    %c0_i32_1 = arith.constant 0 : i32
    return %c0_i32, %c0_i32_0 : i32, i32
  }
  func.func @transform_2(%arg0: i32) -> (i32, i32) {
    %c0_i32 = arith.constant 0 : i32
    %c0_i32_0 = arith.constant 0 : i32
    %c0_i32_1 = arith.constant 0 : i32
    return %c0_i32, %c0_i32_0 : i32, i32
  }
  func.func @transform_3(%arg0: i32) -> (i32, i32) {
    %c0_i32 = arith.constant 0 : i32
    %c0_i32_0 = arith.constant 0 : i32
    %c0_i32_1 = arith.constant 0 : i32
    return %c0_i32, %c0_i32_0 : i32, i32
  }
  func.func @transform_4(%arg0: i32) -> (i32, i32) {
    %c0_i32 = arith.constant 0 : i32
    %c0_i32_0 = arith.constant 0 : i32
    return %arg0, %c0_i32 : i32, i32
  }
  func.func @transform_5(%arg0: i32) -> (i32, i32) {
    %c0_i32 = arith.constant 0 : i32
    %c0_i32_0 = arith.constant 0 : i32
    %c0_i32_1 = arith.constant 0 : i32
    return %c0_i32, %c0_i32_0 : i32, i32
  }
}

</mosaic_0001>

<bundles_post_ra>
// kernel: _lambda_.5
= control target key start
LH: loop header
LB: loop body
LE: loop exit
PB: predicated region body
PF: predicated region fallthrough
CT: control target
= control target key end

     0   :  { %v471_v1 = vmov 0   ;;  %v472_v36 = vmov 1983009808   ;;  %v365_v38 = vlaneseq  ;;  %vm351_vm0 = vcmask 1040384   ;;  %s610_s1 = inlined_call_operand.vmem [shape: bf16[128,512], index: 1, kind: input, shape index: {}]   ;;  %s611_s0 = inlined_call_operand.vmem [shape: bf16[8,128], index: 0, kind: input, shape index: {}]   ;;  %s612_s2 = inlined_call_operand.vmem [shape: f32[8,512], index: 2, kind: output, shape index: {0}]   ;;  %s613_s3 = inlined_call_operand.vmem [shape: f32[2,512], index: 3, kind: output, shape index: {1}]  }
   0x1   :  { %v423_v0 = vld [vmem:[%s610_s1 + $0x4] ss:$16 sps:$4 sm:$0xff]   ;;  %239 = vmatprep.mubr.bf16.mxu0 %v471_v1  ;;  %280 = vmatprep.mubr.bf16.mxu1 %v471_v1  ;;  %v425_v2 = vld [vmem:[%s610_s1 + $0xc] ss:$16 sps:$4 sm:$0xff]   ;;  %v427_v3 = vld [vmem:[%s610_s1] ss:$16 sps:$4 sm:$0xff]   ;;  %v592_v37 = vunpack.c.l.s4 %v472_v36 }
   0x2   :  { %207 = vmatprep.subr.bf16.mxu0 %v423_v0  ;;  %v428_v4 = vld [vmem:[%s610_s1 + $0x8] ss:$16 sps:$4 sm:$0xff]   ;;  %248 = vmatprep.subr.bf16.mxu1 %v425_v2  ;;  %v429_v5 = vld [vmem:[%s610_s1 + $0x24] ss:$16 sps:$4 sm:$0xff]   ;;  %v431_v6 = vld [vmem:[%s610_s1 + $0x2c] ss:$16 sps:$4 sm:$0xff]  }
   0x3   :  { %208 = vmatpush1.bf16.msra.mxu0 %v427_v3  ;;  %249 = vmatpush1.bf16.msra.mxu1 %v428_v4  ;;  %v433_v7 = vld [vmem:[%s610_s1 + $0x20] ss:$16 sps:$4 sm:$0xff]   ;;  %v434_v8 = vld [vmem:[%s610_s1 + $0x28] ss:$16 sps:$4 sm:$0xff]   ;;  %v435_v9 = vld [vmem:[%s610_s1 + $0x44] ss:$16 sps:$4 sm:$0xff]  }
   0x4   :  { %209 = vmatprep.subr.bf16.mxu0 %v429_v5  ;;  %250 = vmatprep.subr.bf16.mxu1 %v431_v6  ;;  %v437_v10 = vld [vmem:[%s610_s1 + $0x4c] ss:$16 sps:$4 sm:$0xff]   ;;  %v439_v11 = vld [vmem:[%s610_s1 + $0x40] ss:$16 sps:$4 sm:$0xff]   ;;  %v440_v12 = vld [vmem:[%s610_s1 + $0x48] ss:$16 sps:$4 sm:$0xff]  }
   0x5   :  { %v441_v13 = vld [vmem:[%s610_s1 + $0x64] ss:$16 sps:$4 sm:$0xff]   ;;  %v443_v14 = vld [vmem:[%s610_s1 + $0x6c] ss:$16 sps:$4 sm:$0xff]   ;;  %v445_v15 = vld [vmem:[%s610_s1 + $0x60] ss:$16 sps:$4 sm:$0xff]  }
   0x6   :  { %v446_v16 = vld [vmem:[%s610_s1 + $0x68] ss:$16 sps:$4 sm:$0xff]   ;;  %v447_v17 = vld [vmem:[%s610_s1 + $0x84] ss:$16 sps:$4 sm:$0xff]   ;;  %v449_v18 = vld [vmem:[%s610_s1 + $0x8c] ss:$16 sps:$4 sm:$0xff]  }
   0x7   :  { %210 = vmatpush1.bf16.msra.mxu0 %v433_v7  ;;  %251 = vmatpush1.bf16.msra.mxu1 %v434_v8  ;;  %v451_v19 = vld [vmem:[%s610_s1 + $0x80] ss:$16 sps:$4 sm:$0xff]   ;;  %v452_v20 = vld [vmem:[%s610_s1 + $0x88] ss:$16 sps:$4 sm:$0xff]   ;;  %v453_v21 = vld [vmem:[%s610_s1 + $0xa4] ss:$16 sps:$4 sm:$0xff]  }
   0x8   :  { %211 = vmatprep.subr.bf16.mxu0 %v435_v9  ;;  %252 = vmatprep.subr.bf16.mxu1 %v437_v10  ;;  %v455_v22 = vld [vmem:[%s610_s1 + $0xac] ss:$16 sps:$4 sm:$0xff]   ;;  %v457_v23 = vld [vmem:[%s610_s1 + $0xa0] ss:$16 sps:$4 sm:$0xff]   ;;  %v458_v24 = vld [vmem:[%s610_s1 + $0xa8] ss:$16 sps:$4 sm:$0xff]  }
   0x9   :  { %v459_v25 = vld [vmem:[%s610_s1 + $0xc4] ss:$16 sps:$4 sm:$0xff]   ;;  %v461_v26 = vld [vmem:[%s610_s1 + $0xcc] ss:$16 sps:$4 sm:$0xff]   ;;  %v463_v27 = vld [vmem:[%s610_s1 + $0xc0] ss:$16 sps:$4 sm:$0xff]  }
   0xa   :  { %v464_v28 = vld [vmem:[%s610_s1 + $0xc8] ss:$16 sps:$4 sm:$0xff]   ;;  %v465_v29 = vld [vmem:[%s610_s1 + $0xe4] ss:$16 sps:$4 sm:$0xff]   ;;  %v467_v30 = vld [vmem:[%s610_s1 + $0xec] ss:$16 sps:$4 sm:$0xff]  }
   0xb   :  { %212 = vmatpush1.bf16.msra.mxu0 %v439_v11  ;;  %253 = vmatpush1.bf16.msra.mxu1 %v440_v12  ;;  %v469_v31 = vld [vmem:[%s610_s1 + $0xe0] ss:$16 sps:$4 sm:$0xff]   ;;  %v470_v32 = vld [vmem:[%s610_s1 + $0xe8] ss:$16 sps:$4 sm:$0xff]  }
   0xc   :  { %213 = vmatprep.subr.bf16.mxu0 %v441_v13  ;;  %254 = vmatprep.subr.bf16.mxu1 %v443_v14  ;;  %v14_v33 = vld [vmem:[%s611_s0] sm:$0xf] }
   0xf   :  { %214 = vmatpush1.bf16.msra.mxu0 %v445_v15  ;;  %255 = vmatpush1.bf16.msra.mxu1 %v446_v16 }
  0x10   :  { %215 = vmatprep.subr.bf16.mxu0 %v447_v17  ;;  %256 = vmatprep.subr.bf16.mxu1 %v449_v18 }
  0x13   :  { %216 = vmatpush1.bf16.msra.mxu0 %v451_v19  ;;  %257 = vmatpush1.bf16.msra.mxu1 %v452_v20 }
  0x14   :  { %217 = vmatprep.subr.bf16.mxu0 %v453_v21  ;;  %258 = vmatprep.subr.bf16.mxu1 %v455_v22 }
  0x17   :  { %218 = vmatpush1.bf16.msra.mxu0 %v457_v23  ;;  %259 = vmatpush1.bf16.msra.mxu1 %v458_v24  ;;  %v364_v23 = vunpack.c.0.s8 %v592_v37  ;;  %v366_v24 = vshrl.u32 %v365_v38, 7 }
  0x18   :  { %219 = vmatprep.subr.bf16.mxu0 %v459_v25  ;;  %260 = vmatprep.subr.bf16.mxu1 %v461_v26 }
  0x1b   :  { %220 = vmatpush1.bf16.msra.mxu0 %v463_v27  ;;  %261 = vmatpush1.bf16.msra.mxu1 %v464_v28 }
  0x1c   :  { %221 = vmatprep.subr.bf16.mxu0 %v465_v29  ;;  %262 = vmatprep.subr.bf16.mxu1 %v467_v30 }
  0x1f   :  { %222 = vmatpush1.bf16.msra.mxu0 %v469_v31  ;;  %263 = vmatpush1.bf16.msra.mxu1 %v470_v32 }
  0x22   :  { %240 = vmatmul.mubr.bf16.vlgmr.msra.gmra.mrb[0].mxu0 %v14_v33  ;;  %281 = vmatmul.mubr.bf16.vlgmr.msra.gmra.mrb[0].mxu1 %v14_v33 }
  0xf5   :  { %v241_v34 = vpop.f32.mrb[0].mxu0  ;;  %v282_v35 = vpop.f32.mrb[0].mxu1 }
  0xf6   :  { %289 = vst [vmem:[%s612_s2] sm:$0xff] %v241_v34  ;;  %v293_v39 = vrot.slane %v241_v34, 4  ;;  %v317_v40 = vmul.f32 %v241_v34, %v241_v34  ;;  %291 = vst [vmem:[%s612_s2 + $0x10] sm:$0xff] %v282_v35  ;;  %v305_v41 = vrot.slane %v282_v35, 4  ;;  %v319_v42 = vmul.f32 %v282_v35, %v282_v35  ;;  %v243_v43 = vpop.f32.mrb[1].mxu0  ;;  %v284_v44 = vpop.f32.mrb[1].mxu1 }
  0xf7   :  { %290 = vst [vmem:[%s612_s2 + $0x8] sm:$0xff] %v243_v43  ;;  %v299_v45 = vrot.slane %v243_v43, 4  ;;  %v318_v46 = vmul.f32 %v243_v43, %v243_v43  ;;  %292 = vst [vmem:[%s612_s2 + $0x18] sm:$0xff] %v284_v44  ;;  %v311_v47 = vrot.slane %v284_v44, 4  ;;  %v320_v48 = vmul.f32 %v284_v44, %v284_v44  ;;  %v245_v49 = vpop.f32.mrb[2].mxu0  ;;  %v286_v50 = vpop.f32.mrb[2].mxu1 }
  0xf8   :  { %v294_v51 = vadd.f32 %v293_v39, %v241_v34  ;;  %v321_v52 = vrot.slane %v317_v40, 4  ;;  %v306_v53 = vadd.f32 %v305_v41, %v282_v35  ;;  %v333_v54 = vrot.slane %v319_v42, 4  ;;  %v246_v55 = vpop.f32.mrb[3].mxu0  ;;  %v287_v56 = vpop.f32.mrb[3].mxu1 }
  0xf9   :  { %v300_v57 = vadd.f32 %v299_v45, %v243_v43  ;;  %v327_v58 = vrot.slane %v318_v46, 4  ;;  %v312_v59 = vadd.f32 %v311_v47, %v284_v44  ;;  %v339_v60 = vrot.slane %v320_v48, 4 }
  0xfa   :  { %v295_v61 = vrot.slane %v294_v51, 2  ;;  %v322_v62 = vadd.f32 %v321_v52, %v317_v40  ;;  %v307_v63 = vrot.slane %v306_v53, 2  ;;  %v334_v0 = vadd.f32 %v333_v54, %v319_v42 }
  0xfb   :  { %v301_v1 = vrot.slane %v300_v57, 2  ;;  %v328_v2 = vadd.f32 %v327_v58, %v318_v46  ;;  %v313_v3 = vrot.slane %v312_v59, 2  ;;  %v340_v4 = vadd.f32 %v339_v60, %v320_v48 }
  0xfc   :  { %v296_v5 = vadd.f32 %v295_v61, %v294_v51  ;;  %v323_v6 = vrot.slane %v322_v62, 2  ;;  %v308_v7 = vadd.f32 %v307_v63, %v306_v53  ;;  %v335_v8 = vrot.slane %v334_v0, 2 }
  0xfd   :  { %v302_v9 = vadd.f32 %v301_v1, %v300_v57  ;;  %v329_v10 = vrot.slane %v328_v2, 2  ;;  %v314_v11 = vadd.f32 %v313_v3, %v312_v59  ;;  %v341_v12 = vrot.slane %v340_v4, 2 }
  0xfe   :  { %v297_v13 = vrot.slane %v296_v5, 1  ;;  %v324_v14 = vadd.f32 %v323_v6, %v322_v62  ;;  %v309_v15 = vrot.slane %v308_v7, 1  ;;  %v336_v16 = vadd.f32 %v335_v8, %v334_v0 }
  0xff   :  { %v303_v17 = vrot.slane %v302_v9, 1  ;;  %v330_v18 = vadd.f32 %v329_v10, %v328_v2  ;;  %v315_v19 = vrot.slane %v314_v11, 1  ;;  %v342_v20 = vadd.f32 %v341_v12, %v340_v4 }
 0x100   :  { %v325_v21 = vrot.slane %v324_v14, 1  ;;  %v337_v22 = vrot.slane %v336_v16, 1  ;;  %v298_v27 = vadd.f32 %v297_v13, %v296_v5  ;;  %v310_v29 = vadd.f32 %v309_v15, %v308_v7 }
 0x101   :  { %v331_v25 = vrot.slane %v330_v18, 1  ;;  %v343_v26 = vrot.slane %v342_v20, 1  ;;  %v304_v31 = vadd.f32 %v303_v17, %v302_v9  ;;  %v316_v33 = vadd.f32 %v315_v19, %v314_v11 }
 0x102   :  { %v326_v28 = vadd.f32 %v325_v21, %v324_v14  ;;  %v338_v30 = vadd.f32 %v337_v22, %v336_v16  ;;  %v367_v39 = vsub.s32 %v364_v23, %v366_v24 }
 0x103   :  { %v332_v32 = vadd.f32 %v331_v25, %v330_v18  ;;  %v344_v34 = vadd.f32 %v343_v26, %v342_v20 }
 0x104   :  { %v352_v35 = vsel %vm351_vm0, %v298_v27, %v326_v28  ;;  %v354_v36 = vsel %vm351_vm0, %v310_v29, %v338_v30 }
 0x105   :  { %v353_v40 = vsel %vm351_vm0, %v304_v31, %v332_v32  ;;  %v355_v41 = vsel %vm351_vm0, %v316_v33, %v344_v34 }
 0x106   :  { %v360_v42 = vcombine.low %v352_v35, %v353_v40  ;;  %v361_v43 = vcombine.low %v354_v36, %v355_v41 }
 0x108   :  { %v368_v37 = vrot.slane %v360_v42, %v367_v39  ;;  %v375_v38 = vrot.slane %v361_v43, %v367_v39 }
 0x10a   :  { %v376_v44 = vcombine.low %v368_v37, %v375_v38 }
 0x10c   :  { %379 = vst [vmem:[%s613_s3] sm:$0xff] %v376_v44 }

// kernel: _lambda_.9
= control target key start
LH: loop header
LB: loop body
LE: loop exit
PB: predicated region body
PF: predicated region fallthrough
CT: control target
= control target key end

     0   :  { %s792_s0 = inlined_call_operand.vmem [shape: f32[8,512], index: 0, kind: input, shape index: {}]   ;;  %s793_s1 = inlined_call_operand.vmem [shape: f32[2,512], index: 1, kind: input, shape index: {}]   ;;  %s794_s2 = inlined_call_operand.vmem [shape: f32[2,512], index: 2, kind: input, shape index: {}]   ;;  %s795_s3 = inlined_call_operand.vmem [shape: bf16[512,128], index: 3, kind: input, shape index: {}]   ;;  %s796_s4 = inlined_call_operand.vmem [shape: f32[1,128], index: 4, kind: input, shape index: {}]   ;;  %s797_s5 = inlined_call_operand.hbm [shape: f32[8,128], index: 5, kind: output, shape index: {}]  }
   0x1   :  { %v574_v0 = vld [vmem:[%s795_s3 + $0x40] sm:$0xff]   ;;  %v578_v4 = vld [vmem:[%s795_s3 + $0x48] sm:$0xff]   ;;  %v582_v8 = vld [vmem:[%s795_s3 + $0x50] sm:$0xff]  }
   0x2   :  { %v575_v1 = vld [vmem:[%s795_s3 + $0xc0] sm:$0xff]   ;;  %529 = vmatprep.subr.bf16.mxu0 %v574_v0  ;;  %v579_v5 = vld [vmem:[%s795_s3 + $0xc8] sm:$0xff]   ;;  %v583_v9 = vld [vmem:[%s795_s3 + $0xd0] sm:$0xff]  }
   0x3   :  { %v576_v2 = vld [vmem:[%s795_s3] sm:$0xff]   ;;  %551 = vmatprep.subr.bf16.mxu1 %v575_v1  ;;  %v580_v6 = vld [vmem:[%s795_s3 + $0x8] sm:$0xff]   ;;  %v584_v10 = vld [vmem:[%s795_s3 + $0x10] sm:$0xff]  }
   0x4   :  { %v577_v3 = vld [vmem:[%s795_s3 + $0x80] sm:$0xff]   ;;  %530 = vmatpush3.bf16.msra.mxu0 %v576_v2  ;;  %v581_v7 = vld [vmem:[%s795_s3 + $0x88] sm:$0xff]   ;;  %v585_v11 = vld [vmem:[%s795_s3 + $0x90] sm:$0xff]  }
   0x5   :  { %552 = vmatpush3.bf16.msra.mxu1 %v577_v3  ;;  %531 = vmatprep.subr.bf16.mxu0 %v578_v4  ;;  %v586_v12 = vld [vmem:[%s795_s3 + $0x58] sm:$0xff]   ;;  %v590_v16 = vld [vmem:[%s795_s3 + $0x60] sm:$0xff]   ;;  %v594_v20 = vld [vmem:[%s795_s3 + $0x68] sm:$0xff]  }
   0x6   :  { %553 = vmatprep.subr.bf16.mxu1 %v579_v5  ;;  %v587_v13 = vld [vmem:[%s795_s3 + $0xd8] sm:$0xff]   ;;  %v591_v17 = vld [vmem:[%s795_s3 + $0xe0] sm:$0xff]   ;;  %v595_v21 = vld [vmem:[%s795_s3 + $0xe8] sm:$0xff]  }
   0x7   :  { %v588_v14 = vld [vmem:[%s795_s3 + $0x18] sm:$0xff]   ;;  %v592_v18 = vld [vmem:[%s795_s3 + $0x20] sm:$0xff]   ;;  %v596_v22 = vld [vmem:[%s795_s3 + $0x28] sm:$0xff]  }
   0x8   :  { %532 = vmatpush3.bf16.msra.mxu0 %v580_v6  ;;  %v589_v15 = vld [vmem:[%s795_s3 + $0x98] sm:$0xff]   ;;  %v593_v19 = vld [vmem:[%s795_s3 + $0xa0] sm:$0xff]   ;;  %v597_v23 = vld [vmem:[%s795_s3 + $0xa8] sm:$0xff]  }
   0x9   :  { %554 = vmatpush3.bf16.msra.mxu1 %v581_v7  ;;  %533 = vmatprep.subr.bf16.mxu0 %v582_v8  ;;  %v598_v24 = vld [vmem:[%s795_s3 + $0x70] sm:$0xff]   ;;  %v602_v28 = vld [vmem:[%s795_s3 + $0x78] sm:$0xff]   ;;  %v26_v32 = vld [vmem:[%s793_s1] sm:$0xff] }
   0xa   :  { %555 = vmatprep.subr.bf16.mxu1 %v583_v9  ;;  %v599_v25 = vld [vmem:[%s795_s3 + $0xf0] sm:$0xff]   ;;  %v603_v29 = vld [vmem:[%s795_s3 + $0xf8] sm:$0xff]   ;;  %v28_v33 = vmul.f32 0.125, %v26_v32 }
   0xb   :  { %v600_v26 = vld [vmem:[%s795_s3 + $0x30] sm:$0xff]   ;;  %v604_v30 = vld [vmem:[%s795_s3 + $0x38] sm:$0xff]  }
   0xc   :  { %534 = vmatpush3.bf16.msra.mxu0 %v584_v10  ;;  %v601_v27 = vld [vmem:[%s795_s3 + $0xb0] sm:$0xff]   ;;  %v605_v31 = vld [vmem:[%s795_s3 + $0xb8] sm:$0xff]  }
   0xd   :  { %556 = vmatpush3.bf16.msra.mxu1 %v585_v11  ;;  %535 = vmatprep.subr.bf16.mxu0 %v586_v12 }
   0xe   :  { %557 = vmatprep.subr.bf16.mxu1 %v587_v13 }
  0x10   :  { %536 = vmatpush3.bf16.msra.mxu0 %v588_v14 }
  0x11   :  { %558 = vmatpush3.bf16.msra.mxu1 %v589_v15  ;;  %537 = vmatprep.subr.bf16.mxu0 %v590_v16 }
  0x12   :  { %559 = vmatprep.subr.bf16.mxu1 %v591_v17 }
  0x14   :  { %538 = vmatpush3.bf16.msra.mxu0 %v592_v18 }
  0x15   :  { %560 = vmatpush3.bf16.msra.mxu1 %v593_v19  ;;  %539 = vmatprep.subr.bf16.mxu0 %v594_v20 }
  0x16   :  { %561 = vmatprep.subr.bf16.mxu1 %v595_v21 }
  0x18   :  { %540 = vmatpush3.bf16.msra.mxu0 %v596_v22 }
  0x19   :  { %562 = vmatpush3.bf16.msra.mxu1 %v597_v23  ;;  %541 = vmatprep.subr.bf16.mxu0 %v598_v24 }
  0x1a   :  { %563 = vmatprep.subr.bf16.mxu1 %v599_v25 }
  0x1c   :  { %542 = vmatpush3.bf16.msra.mxu0 %v600_v26 }
  0x1d   :  { %564 = vmatpush3.bf16.msra.mxu1 %v601_v27  ;;  %543 = vmatprep.subr.bf16.mxu0 %v602_v28 }
  0x1e   :  { %565 = vmatprep.subr.bf16.mxu1 %v603_v29 }
  0x20   :  { %544 = vmatpush3.bf16.msra.mxu0 %v604_v30 }
  0x21   :  { %566 = vmatpush3.bf16.msra.mxu1 %v605_v31 }
  0x22   :  { %10 = vsyncpa [#allocation3], 0  ;;  %v29_v34 = vmul.f32 %v28_v33, %v28_v33  ;;  %v48_v39 = vlaneseq  ;;  %v27_v42 = vld [vmem:[%s794_s2] sm:$0xff]  ;;  %v23_v54 = vld [vmem:[%s792_s0 + $0x8] sm:$0xff]  ;;  %s632_s17 = smov [#allocation2]  }
  0x23   :  { %v25_v61 = vld [vmem:[%s792_s0 + $0x18] sm:$0xff]  ;;  %v22_v63 = vld [vmem:[%s792_s0] sm:$0xff]  ;;  %v24_v1 = vld [vmem:[%s792_s0 + $0x10] sm:$0xff]  ;;  %s487_s18 = sshll.u32 %s632_s17, 4  ;;  %s488_s18 = int_to_ptr.vmem [resolvable:$true] %s487_s18 }
  0x24   :  { %v31_v35 = vrot.slane %v29_v34, 7  ;;  %v49_v40 = vshrl.u32 %v48_v39, 7  ;;  %v496_v30 = vld [vmem:[%s796_s4] ss:$0 sm:$0xff]  ;;  %s608_s19 = scalar_lea.vmem %s488_s18, 128  ;;  %p613_p1 = scmp.lt.s32.totalorder %s488_s18, %s488_s18 }
  0x25   :  { %p609_p0 = scmp.ne.s32.totalorder %s488_s18, %s608_s19  ;;  %p614_p2 = scmp.lt.s32.totalorder %s608_s19, %s608_s19 }
  0x26   :  { %v33_v36 = vsub.f32 %v28_v33, %v31_v35  ;;  %v50_v44 = vsub.s32 0, %v49_v40  ;;  %v54_v45 = vsub.s32 2, %v49_v40  ;;  %v62_v46 = vsub.s32 6, %v49_v40 }
  0x27   :  { %v58_v47 = vsub.s32 4, %v49_v40  ;;  %v91_v49 = vsub.s32 1, %v49_v40  ;;  %v95_v55 = vsub.s32 3, %v49_v40  ;;  %v103_v56 = vsub.s32 7, %v49_v40  ;;  %p615_p3 = por %p614_p2, %p613_p1 }
  0x28   :  { %v34_v37 = vmax.f32 %v33_v36, 0.0  ;;  %v99_v58 = vsub.s32 5, %v49_v40 }
  0x29   :  { %p616_p4 = pnand %p615_p3, %p609_p0 }
  0x2a   :  { %v35_v38 = vadd.f32 1e-05, %v34_v37 }
  0x2c   :  { %606 = vrsqrt.f32 %v35_v38 }
  0x36   :  { %v607_v41 = vpop.eup %606 }
  0x37   :  { %v495_v43 = vrot.slane %v607_v41, 9 }
  0x39   :  { %v41_v48 = vmul.f32 %v495_v43, %v27_v42 }
  0x3b   :  { %v42_v50 = vmul.f32 %v41_v48, %v28_v33  ;;  %v55_v51 = vrot.slane %v41_v48, %v54_v45  ;;  %v63_v52 = vrot.slane %v41_v48, %v62_v46  ;;  %v51_v53 = vrot.slane %v41_v48, %v50_v44 }
  0x3c   :  { %v59_v57 = vrot.slane %v41_v48, %v58_v47 }
  0x3d   :  { %v44_v59 = vrot.slane %v42_v50, 7  ;;  %v75_v60 = vrot.slane %v55_v51, %v50_v44  ;;  %v83_v62 = vrot.slane %v63_v52, %v50_v44  ;;  %v71_v0 = vrot.slane %v51_v53, %v50_v44 }
  0x3e   :  { %v79_v2 = vrot.slane %v59_v57, %v50_v44 }
  0x3f   :  { %v46_v3 = vsub.f32 %v27_v42, %v44_v59  ;;  %v85_v4 = vmul.f32 %v75_v60, %v23_v54  ;;  %v87_v5 = vmul.f32 %v83_v62, %v25_v61  ;;  %v84_v6 = vmul.f32 %v71_v0, %v22_v63 }
  0x40   :  { %v86_v7 = vmul.f32 %v79_v2, %v24_v1 }
  0x41   :  { %v96_v8 = vrot.slane %v46_v3, %v95_v55  ;;  %v104_v9 = vrot.slane %v46_v3, %v103_v56  ;;  %v92_v10 = vrot.slane %v46_v3, %v91_v49  ;;  %v100_v11 = vrot.slane %v46_v3, %v99_v58 }
  0x43   :  { %v116_v12 = vrot.slane %v96_v8, %v91_v49  ;;  %v124_v13 = vrot.slane %v104_v9, %v91_v49  ;;  %v112_v14 = vrot.slane %v92_v10, %v91_v49  ;;  %v120_v15 = vrot.slane %v100_v11, %v91_v49 }
  0x45   :  { %v126_v16 = vadd.f32 %v116_v12, %v85_v4  ;;  %v128_v17 = vadd.f32 %v124_v13, %v87_v5  ;;  %v125_v18 = vadd.f32 %v112_v14, %v84_v6  ;;  %v127_v19 = vadd.f32 %v120_v15, %v86_v7 }
  0x47   :  { %v130_v20 = vmax.f32 %v126_v16, 0.0  ;;  %v132_v21 = vmax.f32 %v128_v17, 0.0  ;;  %v129_v22 = vmax.f32 %v125_v18, 0.0  ;;  %v131_v23 = vmax.f32 %v127_v19, 0.0 }
  0x49   :  { %v134_v24 = vpack.c.bf16 %v130_v20, %v130_v20  ;;  %v136_v25 = vpack.c.bf16 %v132_v21, %v132_v21  ;;  %v133_v26 = vpack.c.bf16 %v129_v22, %v129_v22  ;;  %v135_v27 = vpack.c.bf16 %v131_v23, %v131_v23 }
  0x4b   :  { %432 = vmatprep.mubr.bf16.mxu0 %v134_v24  ;;  %472 = vmatprep.mubr.bf16.mxu1 %v136_v25 }
  0x4c   :  { %433 = vmatmul.mubr.bf16.vlgmr.msra.gmra.mrb[0].mxu0 %v133_v26  ;;  %473 = vmatmul.mubr.bf16.vlgmr.msra.gmra.mrb[0].mxu1 %v135_v27 }
 0x11f   :  { %v545_v28 = vpop.f32.mrb[0].mxu0  ;;  %v567_v29 = vpop.f32.mrb[0].mxu1 }
 0x120   :  { %v546_v31 = vpop.f32.mrb[1].mxu0  ;;  %v568_v32 = vpop.f32.mrb[1].mxu1 }
 0x121   :  { %v547_v33 = vadd.f32 %v546_v31, %v545_v28  ;;  %v569_v34 = vadd.f32 %v568_v32, %v567_v29  ;;  %v548_v35 = vpop.f32.mrb[2].mxu0  ;;  %v570_v36 = vpop.f32.mrb[2].mxu1 }
 0x122   :  { %v549_v37 = vpop.f32.mrb[3].mxu0  ;;  %v571_v38 = vpop.f32.mrb[3].mxu1 }
 0x123   :  { %v435_v39 = vadd.f32 %v547_v33, %v496_v30 }
 0x125   :  { %v475_v40 = vadd.f32 %v569_v34, %v435_v39 }
 0x127   :  { %480 = vst [vmem:[#allocation2] sm:$0xff] %v475_v40 }
 0x128   :  { %619 = shalt.err (!%p616_p4)
}
 0x129   :  { %s620_s21 = scalar_lea.hbm %s797_s5, 128 }
 0x12a   :  { %p621_p5 = scmp.ne.s32.totalorder %s797_s5, %s620_s21  ;;  %p624_p6 = scmp.lt.u32.totalorder %s620_s21, %s797_s5 }
 0x12c   :  { %p626_p7 = pnand %p624_p6, %p621_p5 }
 0x12e   :  { %629 = shalt.err (!%p626_p7)
}
 0x12f   :  { %490 = dma.vmem_to_hbm [thread:$0]  %s488_s18, 128, %s797_s5, [#allocation3]  }
 0x130   :  { %630 = dma.done.wait [#allocation3], 128  }
 0x131   :  { %631 = vsyncadd [#allocation3], 4294967168 }
 0x132   :  { %494 = vsyncpa [#allocation3], 1 }

// kernel: _lambda_.6
= control target key start
LH: loop header
LB: loop body
LE: loop exit
PB: predicated region body
PF: predicated region fallthrough
CT: control target
= control target key end

     0   :  { %vm1128_vm0 = vcmask 1040384   ;;  %s1963_s3 = inlined_call_operand.vmem [shape: bf16[512,512], index: 3, kind: input, shape index: {}]   ;;  %s1964_s1 = inlined_call_operand.vmem [shape: f32[2,512], index: 1, kind: input, shape index: {}]   ;;  %s1965_s2 = inlined_call_operand.vmem [shape: f32[2,512], index: 2, kind: input, shape index: {}]   ;;  %s1966_s0 = inlined_call_operand.vmem [shape: f32[8,512], index: 0, kind: input, shape index: {}]   ;;  %s1967_s4 = inlined_call_operand.vmem [shape: f32[8,512], index: 4, kind: output, shape index: {0}]   ;;  %s1968_s5 = inlined_call_operand.vmem [shape: f32[2,512], index: 5, kind: output, shape index: {1}]  }
   0x1   :  { %v1304_v0 = vld [vmem:[%s1963_s3 + $0x4] ss:$16 sps:$4 sm:$0xff]   ;;  %v1306_v1 = vld [vmem:[%s1963_s3 + $0xc] ss:$16 sps:$4 sm:$0xff]   ;;  %v1308_v2 = vld [vmem:[%s1963_s3] ss:$16 sps:$4 sm:$0xff]  }
   0x2   :  { %902 = vmatprep.subr.bf16.mxu0 %v1304_v0  ;;  %v1309_v3 = vld [vmem:[%s1963_s3 + $0x8] ss:$16 sps:$4 sm:$0xff]   ;;  %984 = vmatprep.subr.bf16.mxu1 %v1306_v1  ;;  %v1310_v4 = vld [vmem:[%s1963_s3 + $0x24] ss:$16 sps:$4 sm:$0xff]   ;;  %v1312_v5 = vld [vmem:[%s1963_s3 + $0x2c] ss:$16 sps:$4 sm:$0xff]  }
   0x3   :  { %903 = vmatpush1.bf16.msra.mxu0 %v1308_v2  ;;  %985 = vmatpush1.bf16.msra.mxu1 %v1309_v3  ;;  %v1314_v6 = vld [vmem:[%s1963_s3 + $0x20] ss:$16 sps:$4 sm:$0xff]   ;;  %v1315_v7 = vld [vmem:[%s1963_s3 + $0x28] ss:$16 sps:$4 sm:$0xff]   ;;  %v1316_v8 = vld [vmem:[%s1963_s3 + $0x44] ss:$16 sps:$4 sm:$0xff]  }
   0x4   :  { %904 = vmatprep.subr.bf16.mxu0 %v1310_v4  ;;  %986 = vmatprep.subr.bf16.mxu1 %v1312_v5  ;;  %v1318_v9 = vld [vmem:[%s1963_s3 + $0x4c] ss:$16 sps:$4 sm:$0xff]   ;;  %v1320_v10 = vld [vmem:[%s1963_s3 + $0x40] ss:$16 sps:$4 sm:$0xff]   ;;  %v1321_v11 = vld [vmem:[%s1963_s3 + $0x48] ss:$16 sps:$4 sm:$0xff]  }
   0x5   :  { %v1322_v12 = vld [vmem:[%s1963_s3 + $0x64] ss:$16 sps:$4 sm:$0xff]   ;;  %v1324_v13 = vld [vmem:[%s1963_s3 + $0x6c] ss:$16 sps:$4 sm:$0xff]   ;;  %v1326_v14 = vld [vmem:[%s1963_s3 + $0x60] ss:$16 sps:$4 sm:$0xff]  }
   0x6   :  { %v1327_v15 = vld [vmem:[%s1963_s3 + $0x68] ss:$16 sps:$4 sm:$0xff]   ;;  %v1328_v16 = vld [vmem:[%s1963_s3 + $0x84] ss:$16 sps:$4 sm:$0xff]   ;;  %v1330_v17 = vld [vmem:[%s1963_s3 + $0x8c] ss:$16 sps:$4 sm:$0xff]  }
   0x7   :  { %905 = vmatpush1.bf16.msra.mxu0 %v1314_v6  ;;  %987 = vmatpush1.bf16.msra.mxu1 %v1315_v7  ;;  %v1332_v18 = vld [vmem:[%s1963_s3 + $0x80] ss:$16 sps:$4 sm:$0xff]   ;;  %v1333_v19 = vld [vmem:[%s1963_s3 + $0x88] ss:$16 sps:$4 sm:$0xff]   ;;  %v1334_v20 = vld [vmem:[%s1963_s3 + $0xa4] ss:$16 sps:$4 sm:$0xff]   ;;  %v45_v6 = vlaneseq }
   0x8   :  { %906 = vmatprep.subr.bf16.mxu0 %v1316_v8  ;;  %988 = vmatprep.subr.bf16.mxu1 %v1318_v9  ;;  %v1336_v21 = vld [vmem:[%s1963_s3 + $0xac] ss:$16 sps:$4 sm:$0xff]   ;;  %v1338_v22 = vld [vmem:[%s1963_s3 + $0xa0] ss:$16 sps:$4 sm:$0xff]   ;;  %v1339_v23 = vld [vmem:[%s1963_s3 + $0xa8] ss:$16 sps:$4 sm:$0xff]  }
   0x9   :  { %v1340_v24 = vld [vmem:[%s1963_s3 + $0xc4] ss:$16 sps:$4 sm:$0xff]   ;;  %v1342_v25 = vld [vmem:[%s1963_s3 + $0xcc] ss:$16 sps:$4 sm:$0xff]   ;;  %v1344_v26 = vld [vmem:[%s1963_s3 + $0xc0] ss:$16 sps:$4 sm:$0xff]  }
   0xa   :  { %v1345_v27 = vld [vmem:[%s1963_s3 + $0xc8] ss:$16 sps:$4 sm:$0xff]   ;;  %v1346_v28 = vld [vmem:[%s1963_s3 + $0xe4] ss:$16 sps:$4 sm:$0xff]   ;;  %v1348_v29 = vld [vmem:[%s1963_s3 + $0xec] ss:$16 sps:$4 sm:$0xff]  }
   0xb   :  { %907 = vmatpush1.bf16.msra.mxu0 %v1320_v10  ;;  %989 = vmatpush1.bf16.msra.mxu1 %v1321_v11  ;;  %v1350_v30 = vld [vmem:[%s1963_s3 + $0xe0] ss:$16 sps:$4 sm:$0xff]   ;;  %v1351_v31 = vld [vmem:[%s1963_s3 + $0xe8] ss:$16 sps:$4 sm:$0xff]   ;;  %v1352_v32 = vld [vmem:[%s1963_s3 + $0x104] ss:$16 sps:$4 sm:$0xff]  }
   0xc   :  { %908 = vmatprep.subr.bf16.mxu0 %v1322_v12  ;;  %990 = vmatprep.subr.bf16.mxu1 %v1324_v13  ;;  %v1354_v33 = vld [vmem:[%s1963_s3 + $0x10c] ss:$16 sps:$4 sm:$0xff]   ;;  %v1356_v34 = vld [vmem:[%s1963_s3 + $0x100] ss:$16 sps:$4 sm:$0xff]   ;;  %v1357_v35 = vld [vmem:[%s1963_s3 + $0x108] ss:$16 sps:$4 sm:$0xff]  }
   0xd   :  { %v1358_v36 = vld [vmem:[%s1963_s3 + $0x124] ss:$16 sps:$4 sm:$0xff]   ;;  %v1360_v37 = vld [vmem:[%s1963_s3 + $0x12c] ss:$16 sps:$4 sm:$0xff]   ;;  %v1362_v38 = vld [vmem:[%s1963_s3 + $0x120] ss:$16 sps:$4 sm:$0xff]  }
   0xe   :  { %v1363_v39 = vld [vmem:[%s1963_s3 + $0x128] ss:$16 sps:$4 sm:$0xff]   ;;  %v1364_v40 = vld [vmem:[%s1963_s3 + $0x144] ss:$16 sps:$4 sm:$0xff]   ;;  %v1366_v41 = vld [vmem:[%s1963_s3 + $0x14c] ss:$16 sps:$4 sm:$0xff]  }
   0xf   :  { %909 = vmatpush1.bf16.msra.mxu0 %v1326_v14  ;;  %991 = vmatpush1.bf16.msra.mxu1 %v1327_v15  ;;  %v1368_v42 = vld [vmem:[%s1963_s3 + $0x140] ss:$16 sps:$4 sm:$0xff]   ;;  %v1369_v43 = vld [vmem:[%s1963_s3 + $0x148] ss:$16 sps:$4 sm:$0xff]   ;;  %v1370_v44 = vld [vmem:[%s1963_s3 + $0x164] ss:$16 sps:$4 sm:$0xff]  }
  0x10   :  { %910 = vmatprep.subr.bf16.mxu0 %v1328_v16  ;;  %992 = vmatprep.subr.bf16.mxu1 %v1330_v17  ;;  %v1372_v45 = vld [vmem:[%s1963_s3 + $0x16c] ss:$16 sps:$4 sm:$0xff]   ;;  %v1374_v46 = vld [vmem:[%s1963_s3 + $0x160] ss:$16 sps:$4 sm:$0xff]   ;;  %v1375_v48 = vld [vmem:[%s1963_s3 + $0x168] ss:$16 sps:$4 sm:$0xff]  }
  0x11   :  { %v23_v47 = vld [vmem:[%s1964_s1] sm:$0xff]  ;;  %v1378_v51 = vld [vmem:[%s1963_s3 + $0x18c] ss:$16 sps:$4 sm:$0xff]   ;;  %v1381_v54 = vld [vmem:[%s1963_s3 + $0x188] ss:$16 sps:$4 sm:$0xff]   ;;  %v1730_v10 = vshrl.u32 %v45_v6, 7 }
  0x12   :  { %v1376_v49 = vld [vmem:[%s1963_s3 + $0x184] ss:$16 sps:$4 sm:$0xff]   ;;  %v25_v50 = vmul.f32 0.125, %v23_v47  ;;  %v1380_v53 = vld [vmem:[%s1963_s3 + $0x180] ss:$16 sps:$4 sm:$0xff]  }
  0x13   :  { %911 = vmatpush1.bf16.msra.mxu0 %v1332_v18  ;;  %993 = vmatpush1.bf16.msra.mxu1 %v1333_v19  ;;  %v1382_v55 = vld [vmem:[%s1963_s3 + $0x1a4] ss:$16 sps:$4 sm:$0xff]   ;;  %v1384_v57 = vld [vmem:[%s1963_s3 + $0x1ac] ss:$16 sps:$4 sm:$0xff]   ;;  %v1386_v59 = vld [vmem:[%s1963_s3 + $0x1a0] ss:$16 sps:$4 sm:$0xff]  }
  0x14   :  { %912 = vmatprep.subr.bf16.mxu0 %v1334_v20  ;;  %994 = vmatprep.subr.bf16.mxu1 %v1336_v21  ;;  %v26_v52 = vmul.f32 %v25_v50, %v25_v50  ;;  %v1387_v60 = vld [vmem:[%s1963_s3 + $0x1a8] ss:$16 sps:$4 sm:$0xff]   ;;  %v1388_v61 = vld [vmem:[%s1963_s3 + $0x1c4] ss:$16 sps:$4 sm:$0xff]   ;;  %v1390_v63 = vld [vmem:[%s1963_s3 + $0x1cc] ss:$16 sps:$4 sm:$0xff]  }
  0x15   :  { %v1392_v1 = vld [vmem:[%s1963_s3 + $0x1c0] ss:$16 sps:$4 sm:$0xff]   ;;  %v1393_v2 = vld [vmem:[%s1963_s3 + $0x1c8] ss:$16 sps:$4 sm:$0xff]   ;;  %v1394_v3 = vld [vmem:[%s1963_s3 + $0x1e4] ss:$16 sps:$4 sm:$0xff]  }
  0x16   :  { %v28_v56 = vrot.slane %v26_v52, 7  ;;  %v1396_v4 = vld [vmem:[%s1963_s3 + $0x1ec] ss:$16 sps:$4 sm:$0xff]   ;;  %v1398_v5 = vld [vmem:[%s1963_s3 + $0x1e0] ss:$16 sps:$4 sm:$0xff]   ;;  %v47_v14 = vsub.s32 0, %v1730_v10 }
  0x17   :  { %913 = vmatpush1.bf16.msra.mxu0 %v1338_v22  ;;  %995 = vmatpush1.bf16.msra.mxu1 %v1339_v23  ;;  %v1399_v7 = vld [vmem:[%s1963_s3 + $0x1e8] ss:$16 sps:$4 sm:$0xff]   ;;  %v1402_v8 = vld [vmem:[%s1963_s3 + $0x204] ss:$16 sps:$4 sm:$0xff]   ;;  %v1405_v9 = vld [vmem:[%s1963_s3 + $0x20c] ss:$16 sps:$4 sm:$0xff]  }
  0x18   :  { %914 = vmatprep.subr.bf16.mxu0 %v1340_v24  ;;  %996 = vmatprep.subr.bf16.mxu1 %v1342_v25  ;;  %v30_v58 = vsub.f32 %v25_v50, %v28_v56  ;;  %v24_v12 = vld [vmem:[%s1965_s2] sm:$0xff]  ;;  %v51_v15 = vsub.s32 2, %v1730_v10  ;;  %v55_v16 = vsub.s32 4, %v1730_v10  ;;  %v88_v21 = vsub.s32 1, %v1730_v10  ;;  %v20_v24 = vld [vmem:[%s1966_s0 + $0x8] sm:$0xff]  ;;  %v22_v56 = vld [vmem:[%s1966_s0 + $0x18] sm:$0xff] }
  0x19   :  { %v92_v22 = vsub.s32 3, %v1730_v10  ;;  %v1423_v6 = vld [vmem:[%s1963_s3 + $0x26c] ss:$16 sps:$4 sm:$0xff]  }
  0x1a   :  { %v31_v62 = vmax.f32 %v30_v58, 0.0 }
  0x1b   :  { %915 = vmatpush1.bf16.msra.mxu0 %v1344_v26  ;;  %997 = vmatpush1.bf16.msra.mxu1 %v1345_v27 }
  0x1c   :  { %916 = vmatprep.subr.bf16.mxu0 %v1346_v28  ;;  %998 = vmatprep.subr.bf16.mxu1 %v1348_v29  ;;  %v32_v0 = vadd.f32 1e-05, %v31_v62  ;;  %v96_v28 = vsub.s32 5, %v1730_v10  ;;  %v19_v29 = vld [vmem:[%s1966_s0] sm:$0xff] }
  0x1d   :  { %v1414_v62 = vld [vmem:[%s1963_s3 + $0x244] ss:$16 sps:$4 sm:$0xff]  }
  0x1e   :  { %1496 = vrsqrt.f32 %v32_v0 }
  0x1f   :  { %917 = vmatpush1.bf16.msra.mxu0 %v1350_v30  ;;  %999 = vmatpush1.bf16.msra.mxu1 %v1351_v31 }
  0x20   :  { %918 = vmatprep.subr.bf16.mxu0 %v1352_v32  ;;  %1000 = vmatprep.subr.bf16.mxu1 %v1354_v33  ;;  %v59_v33 = vsub.s32 6, %v1730_v10 }
  0x23   :  { %919 = vmatpush1.bf16.msra.mxu0 %v1356_v34  ;;  %1001 = vmatpush1.bf16.msra.mxu1 %v1357_v35 }
  0x24   :  { %920 = vmatprep.subr.bf16.mxu0 %v1358_v36  ;;  %1002 = vmatprep.subr.bf16.mxu1 %v1360_v37 }
  0x27   :  { %921 = vmatpush1.bf16.msra.mxu0 %v1362_v38  ;;  %1003 = vmatpush1.bf16.msra.mxu1 %v1363_v39  ;;  %v100_v38 = vsub.s32 7, %v1730_v10 }
  0x28   :  { %922 = vmatprep.subr.bf16.mxu0 %v1364_v40  ;;  %1004 = vmatprep.subr.bf16.mxu1 %v1366_v41  ;;  %v1497_v11 = vpop.eup %1496 }
  0x29   :  { %v1165_v13 = vrot.slane %v1497_v11, 9  ;;  %v1426_v11 = vld [vmem:[%s1963_s3 + $0x284] ss:$16 sps:$4 sm:$0xff]  }
  0x2b   :  { %923 = vmatpush1.bf16.msra.mxu0 %v1368_v42  ;;  %1005 = vmatpush1.bf16.msra.mxu1 %v1369_v43  ;;  %v38_v17 = vmul.f32 %v1165_v13, %v24_v12  ;;  %v1424_v13 = vld [vmem:[%s1963_s3 + $0x280] ss:$16 sps:$4 sm:$0xff]  }
  0x2c   :  { %924 = vmatprep.subr.bf16.mxu0 %v1370_v44  ;;  %1006 = vmatprep.subr.bf16.mxu1 %v1372_v45 }
  0x2d   :  { %v39_v18 = vmul.f32 %v38_v17, %v25_v50  ;;  %v52_v19 = vrot.slane %v38_v17, %v51_v15  ;;  %v48_v20 = vrot.slane %v38_v17, %v47_v14  ;;  %v56_v23 = vrot.slane %v38_v17, %v55_v16  ;;  %v1400_v50 = vld [vmem:[%s1963_s3 + $0x200] ss:$16 sps:$4 sm:$0xff]   ;;  %v1432_v15 = vld [vmem:[%s1963_s3 + $0x2a4] ss:$16 sps:$4 sm:$0xff]   ;;  %v1435_v16 = vld [vmem:[%s1963_s3 + $0x2ac] ss:$16 sps:$4 sm:$0xff]  }
  0x2e   :  { %v60_v42 = vrot.slane %v38_v17, %v59_v33  ;;  %v1430_v17 = vld [vmem:[%s1963_s3 + $0x2a0] ss:$16 sps:$4 sm:$0xff]  }
  0x2f   :  { %925 = vmatpush1.bf16.msra.mxu0 %v1374_v46  ;;  %1007 = vmatpush1.bf16.msra.mxu1 %v1375_v48  ;;  %v41_v25 = vrot.slane %v39_v18, 7  ;;  %v72_v26 = vrot.slane %v52_v19, %v47_v14  ;;  %v68_v27 = vrot.slane %v48_v20, %v47_v14  ;;  %v76_v30 = vrot.slane %v56_v23, %v47_v14  ;;  %v1433_v18 = vld [vmem:[%s1963_s3 + $0x2a8] ss:$16 sps:$4 sm:$0xff]   ;;  %v1438_v19 = vld [vmem:[%s1963_s3 + $0x2c4] ss:$16 sps:$4 sm:$0xff]  }
  0x30   :  { %926 = vmatprep.subr.bf16.mxu0 %v1376_v49  ;;  %1008 = vmatprep.subr.bf16.mxu1 %v1378_v51  ;;  %v80_v48 = vrot.slane %v60_v42, %v47_v14  ;;  %v1403_v51 = vld [vmem:[%s1963_s3 + $0x208] ss:$16 sps:$4 sm:$0xff]   ;;  %v1441_v20 = vld [vmem:[%s1963_s3 + $0x2cc] ss:$16 sps:$4 sm:$0xff]   ;;  %v1444_v23 = vld [vmem:[%s1963_s3 + $0x2e4] ss:$16 sps:$4 sm:$0xff]  }
  0x31   :  { %v43_v31 = vsub.f32 %v24_v12, %v41_v25  ;;  %v82_v32 = vmul.f32 %v72_v26, %v20_v24  ;;  %v81_v35 = vmul.f32 %v68_v27, %v19_v29  ;;  %v1429_v12 = vld [vmem:[%s1963_s3 + $0x28c] ss:$16 sps:$4 sm:$0xff]   ;;  %v1427_v14 = vld [vmem:[%s1963_s3 + $0x288] ss:$16 sps:$4 sm:$0xff]   ;;  %v1442_v25 = vld [vmem:[%s1963_s3 + $0x2e0] ss:$16 sps:$4 sm:$0xff]  }
  0x32   :  { %v84_v58 = vmul.f32 %v80_v48, %v22_v56  ;;  %v1447_v24 = vld [vmem:[%s1963_s3 + $0x2ec] ss:$16 sps:$4 sm:$0xff]   ;;  %v1445_v26 = vld [vmem:[%s1963_s3 + $0x2e8] ss:$16 sps:$4 sm:$0xff]   ;;  %v1450_v27 = vld [vmem:[%s1963_s3 + $0x304] ss:$16 sps:$4 sm:$0xff]  }
  0x33   :  { %927 = vmatpush1.bf16.msra.mxu0 %v1380_v53  ;;  %1009 = vmatpush1.bf16.msra.mxu1 %v1381_v54  ;;  %v93_v34 = vrot.slane %v43_v31, %v92_v22  ;;  %v89_v36 = vrot.slane %v43_v31, %v88_v21  ;;  %v97_v37 = vrot.slane %v43_v31, %v96_v28  ;;  %v1408_v53 = vld [vmem:[%s1963_s3 + $0x224] ss:$16 sps:$4 sm:$0xff]   ;;  %v1411_v54 = vld [vmem:[%s1963_s3 + $0x22c] ss:$16 sps:$4 sm:$0xff]   ;;  %v1439_v22 = vld [vmem:[%s1963_s3 + $0x2c8] ss:$16 sps:$4 sm:$0xff]  }
  0x34   :  { %928 = vmatprep.subr.bf16.mxu0 %v1382_v55  ;;  %1010 = vmatprep.subr.bf16.mxu1 %v1384_v57  ;;  %v101_v45 = vrot.slane %v43_v31, %v100_v38  ;;  %v21_v57 = vld [vmem:[%s1966_s0 + $0x10] sm:$0xff]  ;;  %v1453_v28 = vld [vmem:[%s1963_s3 + $0x30c] ss:$16 sps:$4 sm:$0xff]   ;;  %v1463_v38 = vld [vmem:[%s1963_s3 + $0x348] ss:$16 sps:$4 sm:$0xff]  }
  0x35   :  { %v113_v39 = vrot.slane %v93_v34, %v88_v21  ;;  %v109_v40 = vrot.slane %v89_v36, %v88_v21  ;;  %v117_v41 = vrot.slane %v97_v37, %v88_v21  ;;  %v1448_v29 = vld [vmem:[%s1963_s3 + $0x300] ss:$16 sps:$4 sm:$0xff]   ;;  %v1456_v31 = vld [vmem:[%s1963_s3 + $0x324] ss:$16 sps:$4 sm:$0xff]   ;;  %v1457_v34 = vld [vmem:[%s1963_s3 + $0x328] ss:$16 sps:$4 sm:$0xff]  }
  0x36   :  { %v121_v55 = vrot.slane %v101_v45, %v88_v21  ;;  %v1436_v21 = vld [vmem:[%s1963_s3 + $0x2c0] ss:$16 sps:$4 sm:$0xff]   ;;  %v1465_v36 = vld [vmem:[%s1963_s3 + $0x34c] ss:$16 sps:$4 sm:$0xff]   ;;  %v1469_v42 = vld [vmem:[%s1963_s3 + $0x368] ss:$16 sps:$4 sm:$0xff]  }
  0x37   :  { %929 = vmatpush1.bf16.msra.mxu0 %v1386_v59  ;;  %1011 = vmatpush1.bf16.msra.mxu1 %v1387_v60  ;;  %v123_v43 = vadd.f32 %v113_v39, %v82_v32  ;;  %v122_v44 = vadd.f32 %v109_v40, %v81_v35  ;;  %v83_v59 = vmul.f32 %v76_v30, %v21_v57  ;;  %v1406_v60 = vld [vmem:[%s1963_s3 + $0x220] ss:$16 sps:$4 sm:$0xff]   ;;  %v1451_v30 = vld [vmem:[%s1963_s3 + $0x308] ss:$16 sps:$4 sm:$0xff]   ;;  %v1459_v32 = vld [vmem:[%s1963_s3 + $0x32c] ss:$16 sps:$4 sm:$0xff]  }
  0x38   :  { %930 = vmatprep.subr.bf16.mxu0 %v1388_v61  ;;  %1012 = vmatprep.subr.bf16.mxu1 %v1390_v63  ;;  %v1409_v61 = vld [vmem:[%s1963_s3 + $0x228] ss:$16 sps:$4 sm:$0xff]   ;;  %v1417_v63 = vld [vmem:[%s1963_s3 + $0x24c] ss:$16 sps:$4 sm:$0xff]   ;;  %v125_v0 = vadd.f32 %v121_v55, %v84_v58  ;;  %v1454_v33 = vld [vmem:[%s1963_s3 + $0x320] ss:$16 sps:$4 sm:$0xff]  }
  0x39   :  { %v127_v46 = vmax.f32 %v123_v43, 0.0  ;;  %v126_v47 = vmax.f32 %v122_v44, 0.0  ;;  %v1462_v35 = vld [vmem:[%s1963_s3 + $0x344] ss:$16 sps:$4 sm:$0xff]   ;;  %v1460_v37 = vld [vmem:[%s1963_s3 + $0x340] ss:$16 sps:$4 sm:$0xff]  }
  0x3a   :  { %v1468_v39 = vld [vmem:[%s1963_s3 + $0x364] ss:$16 sps:$4 sm:$0xff]   ;;  %v1471_v40 = vld [vmem:[%s1963_s3 + $0x36c] ss:$16 sps:$4 sm:$0xff]   ;;  %v1472_v45 = vld [vmem:[%s1963_s3 + $0x380] ss:$16 sps:$4 sm:$0xff]  }
  0x3b   :  { %931 = vmatpush1.bf16.msra.mxu0 %v1392_v1  ;;  %1013 = vmatpush1.bf16.msra.mxu1 %v1393_v2  ;;  %v131_v49 = vpack.c.bf16 %v127_v46, %v127_v46  ;;  %v130_v52 = vpack.c.bf16 %v126_v47, %v126_v47  ;;  %v1779_v1 = vadd.f32 %v117_v41, %v83_v59  ;;  %v129_v2 = vmax.f32 %v125_v0, 0.0  ;;  %v1466_v41 = vld [vmem:[%s1963_s3 + $0x360] ss:$16 sps:$4 sm:$0xff]   ;;  %v1474_v43 = vld [vmem:[%s1963_s3 + $0x384] ss:$16 sps:$4 sm:$0xff]  }
  0x3c   :  { %932 = vmatprep.subr.bf16.mxu0 %v1394_v3  ;;  %1014 = vmatprep.subr.bf16.mxu1 %v1396_v4  ;;  %v1412_v3 = vld [vmem:[%s1963_s3 + $0x240] ss:$16 sps:$4 sm:$0xff]   ;;  %v1415_v4 = vld [vmem:[%s1963_s3 + $0x248] ss:$16 sps:$4 sm:$0xff]   ;;  %v1477_v44 = vld [vmem:[%s1963_s3 + $0x38c] ss:$16 sps:$4 sm:$0xff]  }
  0x3d   :  { %934 = vmatprep.mubr.bf16.mxu0 %v131_v49  ;;  %1016 = vmatprep.mubr.bf16.mxu1 %v131_v49  ;;  %v1475_v46 = vld [vmem:[%s1963_s3 + $0x388] ss:$16 sps:$4 sm:$0xff]   ;;  %v1480_v47 = vld [vmem:[%s1963_s3 + $0x3a4] ss:$16 sps:$4 sm:$0xff]   ;;  %v1483_v48 = vld [vmem:[%s1963_s3 + $0x3ac] ss:$16 sps:$4 sm:$0xff]  }
  0x3e   :  { %v1478_v49 = vld [vmem:[%s1963_s3 + $0x3a0] ss:$16 sps:$4 sm:$0xff]   ;;  %v1492_v55 = vld [vmem:[%s1963_s3 + $0x3e4] ss:$16 sps:$4 sm:$0xff]   ;;  %v1495_v56 = vld [vmem:[%s1963_s3 + $0x3ec] ss:$16 sps:$4 sm:$0xff]  }
  0x3f   :  { %933 = vmatpush1.bf16.msra.mxu0 %v1398_v5  ;;  %1015 = vmatpush1.bf16.msra.mxu1 %v1399_v7  ;;  %v1420_v5 = vld [vmem:[%s1963_s3 + $0x264] ss:$16 sps:$4 sm:$0xff]   ;;  %v133_v7 = vpack.c.bf16 %v129_v2, %v129_v2  ;;  %v128_v57 = vmax.f32 %v1779_v1, 0.0  ;;  %v1490_v58 = vld [vmem:[%s1963_s3 + $0x3e0] ss:$16 sps:$4 sm:$0xff]  }
  0x40   :  { %943 = vmatprep.subr.bf16.mxu0 %v1402_v8  ;;  %1025 = vmatprep.subr.bf16.mxu1 %v1405_v9  ;;  %v1418_v8 = vld [vmem:[%s1963_s3 + $0x260] ss:$16 sps:$4 sm:$0xff]   ;;  %v1421_v9 = vld [vmem:[%s1963_s3 + $0x268] ss:$16 sps:$4 sm:$0xff]  }
  0x41   :  { %v1493_v59 = vld [vmem:[%s1963_s3 + $0x3e8] ss:$16 sps:$4 sm:$0xff]  }
  0x42   :  { %935 = vmatmul.mubr.bf16.vlgmr.msra.gmra.mrb[0].mxu0 %v130_v52  ;;  %1017 = vmatmul.mubr.bf16.vlgmr.msra.gmra.mrb[0].mxu1 %v130_v52  ;;  %v1489_v52 = vld [vmem:[%s1963_s3 + $0x3cc] ss:$16 sps:$4 sm:$0xff]  }
  0x43   :  { %944 = vmatpush1.bf16.msra.mxu0 %v1400_v50  ;;  %1026 = vmatpush1.bf16.msra.mxu1 %v1403_v51  ;;  %v1481_v50 = vld [vmem:[%s1963_s3 + $0x3a8] ss:$16 sps:$4 sm:$0xff]   ;;  %v1486_v51 = vld [vmem:[%s1963_s3 + $0x3c4] ss:$16 sps:$4 sm:$0xff]  }
  0x44   :  { %945 = vmatprep.subr.bf16.mxu0 %v1408_v53  ;;  %1027 = vmatprep.subr.bf16.mxu1 %v1411_v54  ;;  %v1484_v53 = vld [vmem:[%s1963_s3 + $0x3c0] ss:$16 sps:$4 sm:$0xff]   ;;  %v1487_v54 = vld [vmem:[%s1963_s3 + $0x3c8] ss:$16 sps:$4 sm:$0xff]  }
  0x45   :  { %975 = vmatprep.mubr.bf16.mxu0 %v133_v7  ;;  %1057 = vmatprep.mubr.bf16.mxu1 %v133_v7 }
  0x47   :  { %946 = vmatpush1.bf16.msra.mxu0 %v1406_v60  ;;  %1028 = vmatpush1.bf16.msra.mxu1 %v1409_v61  ;;  %v132_v60 = vpack.c.bf16 %v128_v57, %v128_v57 }
  0x48   :  { %947 = vmatprep.subr.bf16.mxu0 %v1414_v62  ;;  %1029 = vmatprep.subr.bf16.mxu1 %v1417_v63  ;;  %v1498_v63 = vmov 1983009808  }
  0x49   :  { %v1944_v0 = vunpack.c.l.s4 %v1498_v63 }
  0x4b   :  { %948 = vmatpush1.bf16.msra.mxu0 %v1412_v3  ;;  %1030 = vmatpush1.bf16.msra.mxu1 %v1415_v4 }
  0x4c   :  { %949 = vmatprep.subr.bf16.mxu0 %v1420_v5  ;;  %1031 = vmatprep.subr.bf16.mxu1 %v1423_v6 }
  0x4f   :  { %950 = vmatpush1.bf16.msra.mxu0 %v1418_v8  ;;  %1032 = vmatpush1.bf16.msra.mxu1 %v1421_v9 }
  0x50   :  { %951 = vmatprep.subr.bf16.mxu0 %v1426_v11  ;;  %1033 = vmatprep.subr.bf16.mxu1 %v1429_v12 }
  0x53   :  { %952 = vmatpush1.bf16.msra.mxu0 %v1424_v13  ;;  %1034 = vmatpush1.bf16.msra.mxu1 %v1427_v14 }
  0x54   :  { %953 = vmatprep.subr.bf16.mxu0 %v1432_v15  ;;  %1035 = vmatprep.subr.bf16.mxu1 %v1435_v16 }
  0x57   :  { %954 = vmatpush1.bf16.msra.mxu0 %v1430_v17  ;;  %1036 = vmatpush1.bf16.msra.mxu1 %v1433_v18 }
  0x58   :  { %955 = vmatprep.subr.bf16.mxu0 %v1438_v19  ;;  %1037 = vmatprep.subr.bf16.mxu1 %v1441_v20 }
  0x5b   :  { %956 = vmatpush1.bf16.msra.mxu0 %v1436_v21  ;;  %1038 = vmatpush1.bf16.msra.mxu1 %v1439_v22 }
  0x5c   :  { %957 = vmatprep.subr.bf16.mxu0 %v1444_v23  ;;  %1039 = vmatprep.subr.bf16.mxu1 %v1447_v24 }
  0x5f   :  { %958 = vmatpush1.bf16.msra.mxu0 %v1442_v25  ;;  %1040 = vmatpush1.bf16.msra.mxu1 %v1445_v26 }
  0x60   :  { %959 = vmatprep.subr.bf16.mxu0 %v1450_v27  ;;  %1041 = vmatprep.subr.bf16.mxu1 %v1453_v28 }
  0x63   :  { %960 = vmatpush1.bf16.msra.mxu0 %v1448_v29  ;;  %1042 = vmatpush1.bf16.msra.mxu1 %v1451_v30 }
  0x64   :  { %961 = vmatprep.subr.bf16.mxu0 %v1456_v31  ;;  %1043 = vmatprep.subr.bf16.mxu1 %v1459_v32 }
  0x67   :  { %962 = vmatpush1.bf16.msra.mxu0 %v1454_v33  ;;  %1044 = vmatpush1.bf16.msra.mxu1 %v1457_v34 }
  0x68   :  { %963 = vmatprep.subr.bf16.mxu0 %v1462_v35  ;;  %1045 = vmatprep.subr.bf16.mxu1 %v1465_v36 }
  0x6b   :  { %964 = vmatpush1.bf16.msra.mxu0 %v1460_v37  ;;  %1046 = vmatpush1.bf16.msra.mxu1 %v1463_v38 }
  0x6c   :  { %965 = vmatprep.subr.bf16.mxu0 %v1468_v39  ;;  %1047 = vmatprep.subr.bf16.mxu1 %v1471_v40 }
  0x6f   :  { %966 = vmatpush1.bf16.msra.mxu0 %v1466_v41  ;;  %1048 = vmatpush1.bf16.msra.mxu1 %v1469_v42 }
  0x70   :  { %967 = vmatprep.subr.bf16.mxu0 %v1474_v43  ;;  %1049 = vmatprep.subr.bf16.mxu1 %v1477_v44 }
  0x73   :  { %968 = vmatpush1.bf16.msra.mxu0 %v1472_v45  ;;  %1050 = vmatpush1.bf16.msra.mxu1 %v1475_v46 }
  0x74   :  { %969 = vmatprep.subr.bf16.mxu0 %v1480_v47  ;;  %1051 = vmatprep.subr.bf16.mxu1 %v1483_v48 }
  0x77   :  { %970 = vmatpush1.bf16.msra.mxu0 %v1478_v49  ;;  %1052 = vmatpush1.bf16.msra.mxu1 %v1481_v50  ;;  %v1141_v50 = vunpack.c.0.s8 %v1944_v0 }
  0x78   :  { %971 = vmatprep.subr.bf16.mxu0 %v1486_v51  ;;  %1053 = vmatprep.subr.bf16.mxu1 %v1489_v52 }
  0x79   :  { %v1144_v63 = vsub.s32 %v1141_v50, %v1730_v10 }
  0x7b   :  { %972 = vmatpush1.bf16.msra.mxu0 %v1484_v53  ;;  %1054 = vmatpush1.bf16.msra.mxu1 %v1487_v54 }
  0x7c   :  { %973 = vmatprep.subr.bf16.mxu0 %v1492_v55  ;;  %1055 = vmatprep.subr.bf16.mxu1 %v1495_v56 }
  0x7f   :  { %974 = vmatpush1.bf16.msra.mxu0 %v1490_v58  ;;  %1056 = vmatpush1.bf16.msra.mxu1 %v1493_v59 }
  0x82   :  { %976 = vmatmul.mubr.bf16.vlgmr.msra.gmra.mrb[0].mxu0 %v132_v60  ;;  %1058 = vmatmul.mubr.bf16.vlgmr.msra.gmra.mrb[0].mxu1 %v132_v60 }
 0x155   :  { %v977_v61 = vpop.f32.mrb[0].mxu0  ;;  %v1059_v62 = vpop.f32.mrb[0].mxu1 }
 0x156   :  { %1066 = vst [vmem:[%s1967_s4] sm:$0xff] %v977_v61  ;;  %v1070_v1 = vrot.slane %v977_v61, 4  ;;  %v1094_v2 = vmul.f32 %v977_v61, %v977_v61  ;;  %1068 = vst [vmem:[%s1967_s4 + $0x10] sm:$0xff] %v1059_v62  ;;  %v1082_v3 = vrot.slane %v1059_v62, 4  ;;  %v1096_v4 = vmul.f32 %v1059_v62, %v1059_v62  ;;  %v979_v5 = vpop.f32.mrb[1].mxu0  ;;  %v1061_v6 = vpop.f32.mrb[1].mxu1 }
 0x157   :  { %1067 = vst [vmem:[%s1967_s4 + $0x8] sm:$0xff] %v979_v5  ;;  %v1076_v7 = vrot.slane %v979_v5, 4  ;;  %v1095_v8 = vmul.f32 %v979_v5, %v979_v5  ;;  %1069 = vst [vmem:[%s1967_s4 + $0x18] sm:$0xff] %v1061_v6  ;;  %v1088_v9 = vrot.slane %v1061_v6, 4  ;;  %v1097_v11 = vmul.f32 %v1061_v6, %v1061_v6  ;;  %v981_v12 = vpop.f32.mrb[2].mxu0  ;;  %v1063_v13 = vpop.f32.mrb[2].mxu1 }
 0x158   :  { %v1071_v14 = vadd.f32 %v1070_v1, %v977_v61  ;;  %v1098_v15 = vrot.slane %v1094_v2, 4  ;;  %v1083_v16 = vadd.f32 %v1082_v3, %v1059_v62  ;;  %v1110_v17 = vrot.slane %v1096_v4, 4  ;;  %v982_v18 = vpop.f32.mrb[3].mxu0  ;;  %v1064_v19 = vpop.f32.mrb[3].mxu1 }
 0x159   :  { %v1077_v20 = vadd.f32 %v1076_v7, %v979_v5  ;;  %v1104_v21 = vrot.slane %v1095_v8, 4  ;;  %v1089_v22 = vadd.f32 %v1088_v9, %v1061_v6  ;;  %v1116_v23 = vrot.slane %v1097_v11, 4 }
 0x15a   :  { %v1072_v24 = vrot.slane %v1071_v14, 2  ;;  %v1099_v25 = vadd.f32 %v1098_v15, %v1094_v2  ;;  %v1084_v26 = vrot.slane %v1083_v16, 2  ;;  %v1111_v27 = vadd.f32 %v1110_v17, %v1096_v4 }
 0x15b   :  { %v1078_v28 = vrot.slane %v1077_v20, 2  ;;  %v1105_v29 = vadd.f32 %v1104_v21, %v1095_v8  ;;  %v1090_v30 = vrot.slane %v1089_v22, 2  ;;  %v1117_v31 = vadd.f32 %v1116_v23, %v1097_v11 }
 0x15c   :  { %v1073_v32 = vadd.f32 %v1072_v24, %v1071_v14  ;;  %v1100_v33 = vrot.slane %v1099_v25, 2  ;;  %v1085_v34 = vadd.f32 %v1084_v26, %v1083_v16  ;;  %v1112_v35 = vrot.slane %v1111_v27, 2 }
 0x15d   :  { %v1079_v36 = vadd.f32 %v1078_v28, %v1077_v20  ;;  %v1106_v37 = vrot.slane %v1105_v29, 2  ;;  %v1091_v38 = vadd.f32 %v1090_v30, %v1089_v22  ;;  %v1118_v39 = vrot.slane %v1117_v31, 2 }
 0x15e   :  { %v1074_v40 = vrot.slane %v1073_v32, 1  ;;  %v1101_v41 = vadd.f32 %v1100_v33, %v1099_v25  ;;  %v1086_v42 = vrot.slane %v1085_v34, 1  ;;  %v1113_v43 = vadd.f32 %v1112_v35, %v1111_v27 }
 0x15f   :  { %v1080_v44 = vrot.slane %v1079_v36, 1  ;;  %v1107_v45 = vadd.f32 %v1106_v37, %v1105_v29  ;;  %v1092_v46 = vrot.slane %v1091_v38, 1  ;;  %v1119_v47 = vadd.f32 %v1118_v39, %v1117_v31 }
 0x160   :  { %v1102_v48 = vrot.slane %v1101_v41, 1  ;;  %v1114_v49 = vrot.slane %v1113_v43, 1  ;;  %v1075_v53 = vadd.f32 %v1074_v40, %v1073_v32  ;;  %v1087_v55 = vadd.f32 %v1086_v42, %v1085_v34 }
 0x161   :  { %v1108_v51 = vrot.slane %v1107_v45, 1  ;;  %v1120_v52 = vrot.slane %v1119_v47, 1  ;;  %v1081_v57 = vadd.f32 %v1080_v44, %v1079_v36  ;;  %v1093_v59 = vadd.f32 %v1092_v46, %v1091_v38 }
 0x162   :  { %v1103_v54 = vadd.f32 %v1102_v48, %v1101_v41  ;;  %v1115_v56 = vadd.f32 %v1114_v49, %v1113_v43 }
 0x163   :  { %v1109_v58 = vadd.f32 %v1108_v51, %v1107_v45  ;;  %v1121_v60 = vadd.f32 %v1120_v52, %v1119_v47 }
 0x164   :  { %v1129_v61 = vsel %vm1128_vm0, %v1075_v53, %v1103_v54  ;;  %v1131_v62 = vsel %vm1128_vm0, %v1087_v55, %v1115_v56 }
 0x165   :  { %v1130_v1 = vsel %vm1128_vm0, %v1081_v57, %v1109_v58  ;;  %v1132_v2 = vsel %vm1128_vm0, %v1093_v59, %v1121_v60 }
 0x166   :  { %v1137_v3 = vcombine.low %v1129_v61, %v1130_v1  ;;  %v1138_v4 = vcombine.low %v1131_v62, %v1132_v2 }
 0x168   :  { %v1145_v0 = vrot.slane %v1137_v3, %v1144_v63  ;;  %v1152_v5 = vrot.slane %v1138_v4, %v1144_v63 }
 0x16a   :  { %v1153_v6 = vcombine.low %v1145_v0, %v1152_v5 }
 0x16c   :  { %1156 = vst [vmem:[%s1968_s5] sm:$0xff] %v1153_v6 }

</bundles_post_ra>
